<compile_context>
chip_gen: v7x
topology: tpu7x:2x2x1
jax: 0.10.0
libtpu: 0.0.40
codegen_flags: <defaults>
</compile_context>

<pallas_src>
import functools

import jax
import jax.numpy as jnp
from jax import lax
from jax.experimental import pallas as pl
from jax.experimental.pallas import tpu as pltpu


_TM_TARGET = 512            # row-tile target (multiple of 16)
_TK_MAX = 1024              # max K tile (v7x-safe; also fine on v5e/v6e)
_SINGLE_TILE_K_MAX = 1024   # below this, keep K as one tile (no accumulator)
_VMEM_LIMIT = 48 * 1024 * 1024


def _round_up(v, m):
    return ((v + m - 1) // m) * m


def _cdiv(a, b):
    return -(-a // b)


def _k_tiling(k):
    """Pad K to a lane multiple and choose a K tile (single tile when small).

    For large K, pick the 128-multiple tile <= _TK_MAX that minimizes padding
    (ties -> larger tile = fewer K steps)."""
    kp = _round_up(k, 128)
    if kp <= _SINGLE_TILE_K_MAX:
        return kp, kp
    best_tk, best_pad = 128, kp
    for tk in range(256, _TK_MAX + 1, 128):
        kpad = _round_up(k, tk)
        if kpad <= best_pad:
            best_tk, best_pad = tk, kpad
    return best_pad, best_tk


def _m_tiling(m):
    """Pad rows to a multiple of 16 (bf16 packs 2 rows/sublane) and expose
    >=2 M tiles whenever rows allow, so "parallel" shards across v7x cores."""
    mp = _round_up(max(m, 1), 16)
    n_tiles = max(_cdiv(mp, _TM_TARGET), 2 if mp >= 32 else 1)
    tm = _round_up(_cdiv(mp, n_tiles), 16)
    return n_tiles * tm, tm


def _use_s2d(kh, stride):
    return stride > 1 and kh % stride == 0


# -----------------------------------------------------------------------------
# Kernel 1: conv stage (single K tile)  y = relu((patches @ w + row_b) * row_g)
#   bias/gain are per-row (one value per (n, ho, wo)), broadcast over channels.
#   Grid = (M tiles,); no accumulator needed (K <= 640 for every conv here).
# -----------------------------------------------------------------------------
def _conv_stage_kernel(x_ref, w_ref, b_ref, g_ref, o_ref):
    y = jnp.dot(x_ref[...], w_ref[...], preferred_element_type=jnp.float32)
    y = (y + b_ref[...]) * g_ref[...]           # (tm, 128) + (tm, 1)
    o_ref[...] = jnp.maximum(y, 0.0).astype(o_ref.dtype)


def _im2col(x, kh, stride, ho, wo):
    """NHWC im2col.  When stride divides the kernel (conv1, conv2) use a
    space-to-depth reshape: only (kh//stride)^2 = 4 shifted block slices are
    needed instead of kh^2 strided slices + concat.  Weight rows are
    pre-permuted at prep time to match the resulting feature order."""
    n, h, w, c = x.shape
    if _use_s2d(kh, stride):
        b = kh // stride
        hb, wb = ho + b - 1, wo + b - 1
        xc = x[:, :hb * stride, :wb * stride, :]
        z = xc.reshape(n, hb, stride, wb, stride, c)
        z = z.transpose(0, 1, 3, 2, 4, 5).reshape(n, hb, wb, stride * stride * c)
        cols = [z[:, bi:bi + ho, bj:bj + wo, :]
                for bi in range(b) for bj in range(b)]
    else:
        cols = [x[:, i:i + stride * ho:stride, j:j + stride * wo:stride, :]
                for i in range(kh) for j in range(kh)]
    return jnp.concatenate(cols, axis=-1).reshape(n * ho * wo, kh * kh * c)


def conv_stage(x_nhwc, wmat_pad, bias_hw, gain_hw, kh, stride, cout):
    """One conv + task-bias + task-gain + ReLU stage (bf16 in, bf16 out, NHWC)."""
    n, h, w, c = x_nhwc.shape
    ho = (h - kh) // stride + 1
    wo = (w - kh) // stride + 1

    patches = _im2col(x_nhwc, kh, stride, ho, wo)
    m, k = patches.shape
    kpad, tk = _k_tiling(k)
    assert tk == kpad, "conv stages always fit a single K tile"
    assert wmat_pad.shape[0] == kpad
    npad = wmat_pad.shape[1]
    mpad, tm = _m_tiling(m)

    xp = patches.astype(jnp.bfloat16)            # no-op: activations already bf16
    if mpad != m or kpad != k:
        xp = jnp.pad(xp, ((0, mpad - m), (0, kpad - k)))

    b_rows = jnp.broadcast_to(bias_hw.reshape(1, ho * wo), (n, ho * wo)).reshape(m, 1)
    g_rows = jnp.broadcast_to(gain_hw.reshape(1, ho * wo), (n, ho * wo)).reshape(m, 1)
    if mpad != m:
        b_rows = jnp.pad(b_rows, ((0, mpad - m), (0, 0)))
        g_rows = jnp.pad(g_rows, ((0, mpad - m), (0, 0)))

    grid = (mpad // tm,)
    out = pl.pallas_call(
        _conv_stage_kernel,
        out_shape=jax.ShapeDtypeStruct((mpad, npad), jnp.bfloat16),
        grid_spec=pltpu.PrefetchScalarGridSpec(
            num_scalar_prefetch=0,
            grid=grid,
            in_specs=[
                pl.BlockSpec((tm, kpad), lambda i: (i, 0)),
                pl.BlockSpec((kpad, npad), lambda i: (0, 0)),
                pl.BlockSpec((tm, 1), lambda i: (i, 0)),
                pl.BlockSpec((tm, 1), lambda i: (i, 0)),
            ],
            out_specs=pl.BlockSpec((tm, npad), lambda i: (i, 0)),
        ),
        compiler_params=pltpu.CompilerParams(
            dimension_semantics=("parallel",),
            vmem_limit_bytes=_VMEM_LIMIT),
        cost_estimate=pl.CostEstimate(
            flops=2 * mpad * kpad * npad,
            transcendentals=0,
            bytes_accessed=mpad * kpad * 2 + kpad * npad * 2
                           + mpad * npad * 2 + 2 * mpad * 4),
    )(xp, wmat_pad, b_rows, g_rows)

    # TODO(synk): feeding the next stage straight from the padded (mpad, 128)
    # output (zeroed padded lanes + channel-expanded next-stage weights), or
    # fusing the patch gather into the kernel, would drop this XLA slice.
    return out[:m, :cout].reshape(n, ho, wo, cout)


# -----------------------------------------------------------------------------
# Kernel 2: fused FC head
#   h = relu((x @ W1 + b1) * g1)
#   q = (h @ W2 + b2) * g2          (epilogue on the resident hidden tile)
# Single-K variant (no accumulator) when the flattened features fit one tile;
# K-tiled accumulator variant otherwise.
# -----------------------------------------------------------------------------
def _fc_head_kernel_single(x_ref, w1_ref, b1_ref, g1_ref, w2_ref, b2_ref,
                           g2_ref, o_ref):
    acc = jnp.dot(x_ref[...], w1_ref[...], preferred_element_type=jnp.float32)
    h = jnp.maximum((acc + b1_ref[...]) * g1_ref[...], 0.0)
    q = jnp.dot(h.astype(w2_ref.dtype), w2_ref[...],
                preferred_element_type=jnp.float32)
    o_ref[...] = ((q + b2_ref[...]) * g2_ref[...]).astype(o_ref.dtype)


def _fc_head_kernel_multi(x_ref, w1_ref, b1_ref, g1_ref, w2_ref, b2_ref,
                          g2_ref, o_ref, acc_ref):
    k = pl.program_id(1)

    @pl.when(k == 0)
    def _():
        acc_ref[...] = jnp.zeros_like(acc_ref)

    acc_ref[...] += jnp.dot(x_ref[...], w1_ref[...],
                            preferred_element_type=jnp.float32)

    @pl.when(k == pl.num_programs(1) - 1)
    def _():
        h = jnp.maximum((acc_ref[...] + b1_ref[...]) * g1_ref[...], 0.0)
        q = jnp.dot(h.astype(w2_ref.dtype), w2_ref[...],
                    preferred_element_type=jnp.float32)
        o_ref[...] = ((q + b2_ref[...]) * g2_ref[...]).astype(o_ref.dtype)


def fc_head(x_flat, w1_pad, b1, g1, w2_pad, b2, g2, n_actions):
    batch, k = x_flat.shape
    k1pad, hid = w1_pad.shape
    n2pad = w2_pad.shape[1]
    kpad, tk = _k_tiling(k)
    assert kpad == k1pad
    mpad, tm = _m_tiling(batch)

    xp = x_flat.astype(jnp.bfloat16)             # no-op: conv3 output is bf16
    if mpad != batch or kpad != k:
        xp = jnp.pad(xp, ((0, mpad - batch), (0, kpad - k)))

    nk = kpad // tk
    cost = pl.CostEstimate(
        flops=2 * mpad * kpad * hid + 2 * mpad * hid * n2pad,
        transcendentals=0,
        bytes_accessed=mpad * kpad * 2 + kpad * hid * 2 + hid * n2pad * 2
                       + mpad * n2pad * 4)

    if nk == 1:
        out = pl.pallas_call(
            _fc_head_kernel_single,
            out_shape=jax.ShapeDtypeStruct((mpad, n2pad), jnp.float32),
            grid_spec=pltpu.PrefetchScalarGridSpec(
                num_scalar_prefetch=0,
                grid=(mpad // tm,),
                in_specs=[
                    pl.BlockSpec((tm, kpad), lambda i: (i, 0)),
                    pl.BlockSpec((kpad, hid), lambda i: (0, 0)),
                    pl.BlockSpec((1, hid), lambda i: (0, 0)),
                    pl.BlockSpec((1, hid), lambda i: (0, 0)),
                    pl.BlockSpec((hid, n2pad), lambda i: (0, 0)),
                    pl.BlockSpec((1, n2pad), lambda i: (0, 0)),
                    pl.BlockSpec((1, n2pad), lambda i: (0, 0)),
                ],
                out_specs=pl.BlockSpec((tm, n2pad), lambda i: (i, 0)),
            ),
            compiler_params=pltpu.CompilerParams(
                dimension_semantics=("parallel",),
                vmem_limit_bytes=_VMEM_LIMIT),
            cost_estimate=cost,
        )(xp, w1_pad, b1, g1, w2_pad, b2, g2)
    else:
        out = pl.pallas_call(
            _fc_head_kernel_multi,
            out_shape=jax.ShapeDtypeStruct((mpad, n2pad), jnp.float32),
            grid_spec=pltpu.PrefetchScalarGridSpec(
                num_scalar_prefetch=0,
                grid=(mpad // tm, nk),
                in_specs=[
                    pl.BlockSpec((tm, tk), lambda i, kk: (i, kk)),
                    pl.BlockSpec((tk, hid), lambda i, kk: (kk, 0)),
                    pl.BlockSpec((1, hid), lambda i, kk: (0, 0)),
                    pl.BlockSpec((1, hid), lambda i, kk: (0, 0)),
                    pl.BlockSpec((hid, n2pad), lambda i, kk: (0, 0)),
                    pl.BlockSpec((1, n2pad), lambda i, kk: (0, 0)),
                    pl.BlockSpec((1, n2pad), lambda i, kk: (0, 0)),
                ],
                out_specs=pl.BlockSpec((tm, n2pad), lambda i, kk: (i, 0)),
                scratch_shapes=[pltpu.VMEM((tm, hid), jnp.float32)],
            ),
            compiler_params=pltpu.CompilerParams(
                dimension_semantics=("parallel", "arbitrary"),
                vmem_limit_bytes=_VMEM_LIMIT),
            cost_estimate=cost,
        )(xp, w1_pad, b1, g1, w2_pad, b2, g2)
    return out[:batch, :n_actions]


# -----------------------------------------------------------------------------
# Parameter init (torch layout) + one-time inference prep (pad / permute / cast)
# -----------------------------------------------------------------------------
_CONV_CFG = ((8, 4, 32), (4, 2, 64), (3, 1, 128))   # (kernel, stride, cout)


def _conv_out(h, w, k, s):
    return (h - k) // s + 1, (w - k) // s + 1


def compute_shapes(image_shape):
    s1 = _conv_out(image_shape[0], image_shape[1], 8, 4)
    s2 = _conv_out(s1[0], s1[1], 4, 2)
    s3 = _conv_out(s2[0], s2[1], 3, 1)
    flat = 128 * s3[0] * s3[1]
    return s1, s2, s3, flat


def init_params(key, input_channels, image_shape, n_actions, n_tasks):
    s1, s2, s3, flat = compute_shapes(image_shape)
    spatial_shapes = (s1, s2, s3)
    keys = jax.random.split(key, 64)
    ki = iter(range(64))
    p = {}
    p["conv1_w"] = 0.05 * jax.random.normal(keys[next(ki)], (32, input_channels, 8, 8), jnp.float32)
    p["conv2_w"] = 0.05 * jax.random.normal(keys[next(ki)], (64, 32, 4, 4), jnp.float32)
    p["conv3_w"] = 0.05 * jax.random.normal(keys[next(ki)], (128, 64, 3, 3), jnp.float32)
    for layer in range(1, 4):
        shp = spatial_shapes[layer - 1]
        for task in range(n_tasks):
            p[f"bias{layer}_{task}"] = 0.1 * jax.random.normal(keys[next(ki)], shp, jnp.float32)
            p[f"gain{layer}_{task}"] = 1.0 + 0.1 * jax.random.normal(keys[next(ki)], shp, jnp.float32)
    p["l1_w"] = 0.05 * jax.random.normal(keys[next(ki)], (1024, flat), jnp.float32)
    p["l2_w"] = 0.05 * jax.random.normal(keys[next(ki)], (n_actions, 1024), jnp.float32)
    fc_sizes = [1024, n_actions]
    for layer in range(1, 3):
        for task in range(n_tasks):
            p[f"bias_l{layer}_{task}"] = 0.1 * jax.random.normal(
                keys[next(ki)], (fc_sizes[layer - 1],), jnp.float32)
            p[f"gain_l{layer}_{task}"] = 1.0 + 0.1 * jax.random.normal(
                keys[next(ki)], (fc_sizes[layer - 1],), jnp.float32)
    return p


def _prep_conv_weight(w, stride):
    """(cout, cin, kh, kw) torch weight -> (Kpad, 128) bf16 matrix whose row
    order matches _im2col's feature order (space-to-depth when stride | kh)."""
    cout, cin, kh, kw = w.shape
    wt = w.transpose(2, 3, 1, 0)                         # (kh, kw, cin, cout)
    if _use_s2d(kh, stride):
        b = kh // stride
        wt = wt.reshape(b, stride, b, stride, cin, cout) # [bi, di, bj, dj, c, o]
        wt = wt.transpose(0, 2, 1, 3, 4, 5)              # [bi, bj, di, dj, c, o]
    wmat = wt.reshape(kh * kw * cin, cout)
    k = kh * kw * cin
    kpad, _ = _k_tiling(k)
    npad = _round_up(cout, 128)
    wmat = jnp.pad(wmat, ((0, kpad - k), (0, npad - cout)))
    return wmat.astype(jnp.bfloat16)


def _prep_l1_weight(w, c, h, wdim):
    out_dim, flat = w.shape
    # permute columns from NCHW-flatten order (c,h,w) to NHWC order (h,w,c)
    w_nhwc = w.reshape(out_dim, c, h, wdim).transpose(0, 2, 3, 1).reshape(out_dim, flat)
    wmat = w_nhwc.T                                      # (flat, 1024)
    kpad, _ = _k_tiling(flat)
    wmat = jnp.pad(wmat, ((0, kpad - flat), (0, 0)))
    return wmat.astype(jnp.bfloat16)


def _prep_l2_weight(w):
    n_actions, hid = w.shape
    npad = _round_up(n_actions, 128)
    return jnp.pad(w.T, ((0, 0), (0, npad - n_actions))).astype(jnp.bfloat16)


def prepare_params(params, image_shape, n_tasks):
    """One-time layout prep: transposed / permuted / lane-padded bf16 weights."""
    _, _, s3, _ = compute_shapes(image_shape)
    prep = {}
    for i in range(1, 4):
        _, stride, _ = _CONV_CFG[i - 1]
        prep[f"conv{i}_w"] = _prep_conv_weight(params[f"conv{i}_w"], stride)
    prep["l1_w"] = _prep_l1_weight(params["l1_w"], 128, s3[0], s3[1])
    prep["l2_w"] = _prep_l2_weight(params["l2_w"])
    n_act_pad = prep["l2_w"].shape[1]
    for task in range(n_tasks):
        for layer in range(1, 4):
            prep[f"bias{layer}_{task}"] = params[f"bias{layer}_{task}"]
            prep[f"gain{layer}_{task}"] = params[f"gain{layer}_{task}"]
        prep[f"bias_l1_{task}"] = params[f"bias_l1_{task}"].reshape(1, -1)
        prep[f"gain_l1_{task}"] = params[f"gain_l1_{task}"].reshape(1, -1)
        b2 = params[f"bias_l2_{task}"].reshape(1, -1)
        g2 = params[f"gain_l2_{task}"].reshape(1, -1)
        prep[f"bias_l2_{task}"] = jnp.pad(b2, ((0, 0), (0, n_act_pad - b2.shape[1])))
        prep[f"gain_l2_{task}"] = jnp.pad(g2, ((0, 0), (0, n_act_pad - g2.shape[1])))
    return prep


# -----------------------------------------------------------------------------
# Forward
# -----------------------------------------------------------------------------
def ewc_dqn_forward(prep, x_nchw, task_label, n_actions):
    """Pallas-backed forward of EWCConvDeepQN.forward(x, task_label)."""
    x = x_nchw.astype(jnp.bfloat16).transpose(0, 2, 3, 1)   # NCHW -> NHWC + bf16, once
    for i in range(1, 4):
        k, s, cout = _CONV_CFG[i - 1]
        x = conv_stage(x, prep[f"conv{i}_w"],
                       prep[f"bias{i}_{task_label}"],
                       prep[f"gain{i}_{task_label}"],
                       k, s, cout)
    x_flat = x.reshape(x.shape[0], -1)               # NHWC flatten (l1_w permuted to match)
    return fc_head(x_flat, prep["l1_w"],
                   prep[f"bias_l1_{task_label}"], prep[f"gain_l1_{task_label}"],
                   prep["l2_w"],
                   prep[f"bias_l2_{task_label}"], prep[f"gain_l2_{task_label}"],
                   n_actions)


# Pure-JAX reference for the correctness check (operates on original params).
def reference_forward(params, x, task_label):
    strides = (4, 2, 1)

    def conv(x, w, s):
        return lax.conv_general_dilated(
            x, w, (s, s), "VALID", dimension_numbers=("NCHW", "OIHW", "NCHW"))

    for i in range(1, 4):
        x = conv(x, params[f"conv{i}_w"], strides[i - 1])
        x = (x + params[f"bias{i}_{task_label}"]) * params[f"gain{i}_{task_label}"]
        x = jnp.maximum(x, 0.0)
    x = x.reshape(x.shape[0], -1)
    x = x @ params["l1_w"].T
    x = (x + params[f"bias_l1_{task_label}"]) * params[f"gain_l1_{task_label}"]
    x = jnp.maximum(x, 0.0)
    x = x @ params["l2_w"].T
    x = (x + params[f"bias_l2_{task_label}"]) * params[f"gain_l2_{task_label}"]
    return x


if __name__ == "__main__":
    # Small but conv-valid config: 36x36 image -> 8x8 -> 3x3 -> 1x1 spatial.
    batch = 2
    input_channels = 4
    image_shape = (36, 36)
    n_actions = 6
    n_tasks = 3
    task_label = 1

    key = jax.random.PRNGKey(0)
    pkey, xkey = jax.random.split(key)
    params = init_params(pkey, input_channels, image_shape, n_actions, n_tasks)
    prep = prepare_params(params, image_shape, n_tasks)
    x = jax.random.normal(xkey, (batch, input_channels, *image_shape), jnp.float32)

    fwd = jax.jit(functools.partial(ewc_dqn_forward,
                                    task_label=task_label, n_actions=n_actions))
    q_values = jax.block_until_ready(fwd(prep, x))

    ref = jax.block_until_ready(reference_forward(params, x, task_label))
    assert q_values.shape == (batch, n_actions)
    max_err = jnp.max(jnp.abs(q_values - ref))
    assert jnp.allclose(q_values, ref, atol=5e-2, rtol=5e-2), (
        f"mismatch: max abs err {max_err}")

    print("KERNEL_OK")
</pallas_src>

<mosaic_0001>
module attributes {stable_mosaic.version = 11 : i64} {
  func.func @_conv_stage_kernel(%arg0: i32, %arg1: memref<64x256xbf16, #tpu.memory_space<vmem>>, %arg2: memref<256x128xbf16, #tpu.memory_space<vmem>>, %arg3: memref<64x1xf32, #tpu.memory_space<vmem>>, %arg4: memref<64x1xf32, #tpu.memory_space<vmem>>, %arg5: memref<64x128xbf16, #tpu.memory_space<vmem>>) attributes {dimension_semantics = [#tpu.dimension_semantics<parallel>], iteration_bounds = array<i64: 2>, scalar_prefetch = 0 : i64, scratch_operands = 0 : i64, tpu.core_type = #tpu.core_type<tc>, window_params = [{transform_indices = @transform_0, window_bounds = array<i64: 64, 256>}, {pipeline_mode = #tpu.pipeline_mode<synchronous>, transform_indices = @transform_1, window_bounds = array<i64: 256, 128>}, {transform_indices = @transform_2, window_bounds = array<i64: 64, 1>}, {transform_indices = @transform_3, window_bounds = array<i64: 64, 1>}, {transform_indices = @transform_4, window_bounds = array<i64: 64, 128>}]} {
    %c0 = arith.constant 0 : index
    %c0_0 = arith.constant 0 : index
    %0 = vector.load %arg1[%c0, %c0_0] : memref<64x256xbf16, #tpu.memory_space<vmem>>, vector<64x256xbf16>
    %c0_1 = arith.constant 0 : index
    %c0_2 = arith.constant 0 : index
    %1 = vector.load %arg2[%c0_1, %c0_2] : memref<256x128xbf16, #tpu.memory_space<vmem>>, vector<256x128xbf16>
    %cst = arith.constant dense<0.000000e+00> : vector<64x128xf32>
    %2 = tpu.matmul %0, %1, %cst {dimension_numbers = #tpu.dot_dimension_numbers<[1], [0], [0], [1], [0, 0, 1, 1], [], []>} : vector<64x256xbf16>, vector<256x128xbf16>, vector<64x128xf32> -> vector<64x128xf32>
    %c0_3 = arith.constant 0 : index
    %c0_4 = arith.constant 0 : index
    %3 = vector.load %arg3[%c0_3, %c0_4] : memref<64x1xf32, #tpu.memory_space<vmem>>, vector<64x1xf32>
    %4 = vector.broadcast %3 : vector<64x1xf32> to vector<64x128xf32>
    %5 = arith.addf %2, %4 : vector<64x128xf32>
    %c0_5 = arith.constant 0 : index
    %c0_6 = arith.constant 0 : index
    %6 = vector.load %arg4[%c0_5, %c0_6] : memref<64x1xf32, #tpu.memory_space<vmem>>, vector<64x1xf32>
    %7 = vector.broadcast %6 : vector<64x1xf32> to vector<64x128xf32>
    %8 = arith.mulf %5, %7 : vector<64x128xf32>
    %cst_7 = arith.constant 0.000000e+00 : f32
    %9 = vector.broadcast %cst_7 : f32 to vector<64x128xf32>
    %10 = arith.maximumf %8, %9 : vector<64x128xf32>
    %11 = arith.truncf %10 : vector<64x128xf32> to vector<64x128xbf16>
    %c0_8 = arith.constant 0 : index
    %c0_9 = arith.constant 0 : index
    %12 = vector.load %arg5[%c0_8, %c0_9] : memref<64x128xbf16, #tpu.memory_space<vmem>>, vector<64x128xbf16>
    tpu.vector_store %arg5[%c0_8, %c0_9], %11 {strides = array<i32>} : memref<64x128xbf16, #tpu.memory_space<vmem>>, vector<64x128xbf16>,
    return
  }
  func.func @transform_0(%arg0: i32) -> (i32, i32) {
    %c0_i32 = arith.constant 0 : i32
    %c0_i32_0 = arith.constant 0 : i32
    return %arg0, %c0_i32 : i32, i32
  }
  func.func @transform_1(%arg0: i32) -> (i32, i32) {
    %c0_i32 = arith.constant 0 : i32
    %c0_i32_0 = arith.constant 0 : i32
    %c0_i32_1 = arith.constant 0 : i32
    return %c0_i32, %c0_i32_0 : i32, i32
  }
  func.func @transform_2(%arg0: i32) -> (i32, i32) {
    %c0_i32 = arith.constant 0 : i32
    %c0_i32_0 = arith.constant 0 : i32
    return %arg0, %c0_i32 : i32, i32
  }
  func.func @transform_3(%arg0: i32) -> (i32, i32) {
    %c0_i32 = arith.constant 0 : i32
    %c0_i32_0 = arith.constant 0 : i32
    return %arg0, %c0_i32 : i32, i32
  }
  func.func @transform_4(%arg0: i32) -> (i32, i32) {
    %c0_i32 = arith.constant 0 : i32
    %c0_i32_0 = arith.constant 0 : i32
    return %arg0, %c0_i32 : i32, i32
  }
}

module attributes {stable_mosaic.version = 11 : i64} {
  func.func @_conv_stage_kernel(%arg0: i32, %arg1: memref<16x512xbf16, #tpu.memory_space<vmem>>, %arg2: memref<512x128xbf16, #tpu.memory_space<vmem>>, %arg3: memref<16x1xf32, #tpu.memory_space<vmem>>, %arg4: memref<16x1xf32, #tpu.memory_space<vmem>>, %arg5: memref<16x128xbf16, #tpu.memory_space<vmem>>) attributes {dimension_semantics = [#tpu.dimension_semantics<parallel>], iteration_bounds = array<i64: 2>, scalar_prefetch = 0 : i64, scratch_operands = 0 : i64, tpu.core_type = #tpu.core_type<tc>, window_params = [{transform_indices = @transform_0, window_bounds = array<i64: 16, 512>}, {pipeline_mode = #tpu.pipeline_mode<synchronous>, transform_indices = @transform_1, window_bounds = array<i64: 512, 128>}, {transform_indices = @transform_2, window_bounds = array<i64: 16, 1>}, {transform_indices = @transform_3, window_bounds = array<i64: 16, 1>}, {transform_indices = @transform_4, window_bounds = array<i64: 16, 128>}]} {
    %c0 = arith.constant 0 : index
    %c0_0 = arith.constant 0 : index
    %0 = vector.load %arg1[%c0, %c0_0] : memref<16x512xbf16, #tpu.memory_space<vmem>>, vector<16x512xbf16>
    %c0_1 = arith.constant 0 : index
    %c0_2 = arith.constant 0 : index
    %1 = vector.load %arg2[%c0_1, %c0_2] : memref<512x128xbf16, #tpu.memory_space<vmem>>, vector<512x128xbf16>
    %cst = arith.constant dense<0.000000e+00> : vector<16x128xf32>
    %2 = tpu.matmul %0, %1, %cst {dimension_numbers = #tpu.dot_dimension_numbers<[1], [0], [0], [1], [0, 0, 1, 1], [], []>} : vector<16x512xbf16>, vector<512x128xbf16>, vector<16x128xf32> -> vector<16x128xf32>
    %c0_3 = arith.constant 0 : index
    %c0_4 = arith.constant 0 : index
    %3 = vector.load %arg3[%c0_3, %c0_4] : memref<16x1xf32, #tpu.memory_space<vmem>>, vector<16x1xf32>
    %4 = vector.broadcast %3 : vector<16x1xf32> to vector<16x128xf32>
    %5 = arith.addf %2, %4 : vector<16x128xf32>
    %c0_5 = arith.constant 0 : index
    %c0_6 = arith.constant 0 : index
    %6 = vector.load %arg4[%c0_5, %c0_6] : memref<16x1xf32, #tpu.memory_space<vmem>>, vector<16x1xf32>
    %7 = vector.broadcast %6 : vector<16x1xf32> to vector<16x128xf32>
    %8 = arith.mulf %5, %7 : vector<16x128xf32>
    %cst_7 = arith.constant 0.000000e+00 : f32
    %9 = vector.broadcast %cst_7 : f32 to vector<16x128xf32>
    %10 = arith.maximumf %8, %9 : vector<16x128xf32>
    %11 = arith.truncf %10 : vector<16x128xf32> to vector<16x128xbf16>
    %c0_8 = arith.constant 0 : index
    %c0_9 = arith.constant 0 : index
    %12 = vector.load %arg5[%c0_8, %c0_9] : memref<16x128xbf16, #tpu.memory_space<vmem>>, vector<16x128xbf16>
    tpu.vector_store %arg5[%c0_8, %c0_9], %11 {strides = array<i32>} : memref<16x128xbf16, #tpu.memory_space<vmem>>, vector<16x128xbf16>,
    return
  }
  func.func @transform_0(%arg0: i32) -> (i32, i32) {
    %c0_i32 = arith.constant 0 : i32
    %c0_i32_0 = arith.constant 0 : i32
    return %arg0, %c0_i32 : i32, i32
  }
  func.func @transform_1(%arg0: i32) -> (i32, i32) {
    %c0_i32 = arith.constant 0 : i32
    %c0_i32_0 = arith.constant 0 : i32
    %c0_i32_1 = arith.constant 0 : i32
    return %c0_i32, %c0_i32_0 : i32, i32
  }
  func.func @transform_2(%arg0: i32) -> (i32, i32) {
    %c0_i32 = arith.constant 0 : i32
    %c0_i32_0 = arith.constant 0 : i32
    return %arg0, %c0_i32 : i32, i32
  }
  func.func @transform_3(%arg0: i32) -> (i32, i32) {
    %c0_i32 = arith.constant 0 : i32
    %c0_i32_0 = arith.constant 0 : i32
    return %arg0, %c0_i32 : i32, i32
  }
  func.func @transform_4(%arg0: i32) -> (i32, i32) {
    %c0_i32 = arith.constant 0 : i32
    %c0_i32_0 = arith.constant 0 : i32
    return %arg0, %c0_i32 : i32, i32
  }
}

module attributes {stable_mosaic.version = 11 : i64} {
  func.func @_fc_head_kernel_single(%arg0: i32, %arg1: memref<16x128xbf16, #tpu.memory_space<vmem>>, %arg2: memref<128x1024xbf16, #tpu.memory_space<vmem>>, %arg3: memref<1x1024xf32, #tpu.memory_space<vmem>>, %arg4: memref<1x1024xf32, #tpu.memory_space<vmem>>, %arg5: memref<1024x128xbf16, #tpu.memory_space<vmem>>, %arg6: memref<1x128xf32, #tpu.memory_space<vmem>>, %arg7: memref<1x128xf32, #tpu.memory_space<vmem>>, %arg8: memref<16x128xf32, #tpu.memory_space<vmem>>) attributes {dimension_semantics = [#tpu.dimension_semantics<parallel>], iteration_bounds = array<i64: 1>, scalar_prefetch = 0 : i64, scratch_operands = 0 : i64, tpu.core_type = #tpu.core_type<tc>, window_params = [{transform_indices = @transform_0, window_bounds = array<i64: 16, 128>}, {pipeline_mode = #tpu.pipeline_mode<synchronous>, transform_indices = @transform_1, window_bounds = array<i64: 128, 1024>}, {pipeline_mode = #tpu.pipeline_mode<synchronous>, transform_indices = @transform_2, window_bounds = array<i64: 1, 1024>}, {pipeline_mode = #tpu.pipeline_mode<synchronous>, transform_indices = @transform_3, window_bounds = array<i64: 1, 1024>}, {pipeline_mode = #tpu.pipeline_mode<synchronous>, transform_indices = @transform_4, window_bounds = array<i64: 1024, 128>}, {pipeline_mode = #tpu.pipeline_mode<synchronous>, transform_indices = @transform_5, window_bounds = array<i64: 1, 128>}, {pipeline_mode = #tpu.pipeline_mode<synchronous>, transform_indices = @transform_6, window_bounds = array<i64: 1, 128>}, {transform_indices = @transform_7, window_bounds = array<i64: 16, 128>}]} {
    %c0 = arith.constant 0 : index
    %c0_0 = arith.constant 0 : index
    %0 = vector.load %arg1[%c0, %c0_0] : memref<16x128xbf16, #tpu.memory_space<vmem>>, vector<16x128xbf16>
    %c0_1 = arith.constant 0 : index
    %c0_2 = arith.constant 0 : index
    %1 = vector.load %arg2[%c0_1, %c0_2] : memref<128x1024xbf16, #tpu.memory_space<vmem>>, vector<128x1024xbf16>
    %cst = arith.constant dense<0.000000e+00> : vector<16x1024xf32>
    %2 = tpu.matmul %0, %1, %cst {dimension_numbers = #tpu.dot_dimension_numbers<[1], [0], [0], [1], [0, 0, 1, 1], [], []>} : vector<16x128xbf16>, vector<128x1024xbf16>, vector<16x1024xf32> -> vector<16x1024xf32>
    %c0_3 = arith.constant 0 : index
    %c0_4 = arith.constant 0 : index
    %3 = vector.load %arg3[%c0_3, %c0_4] : memref<1x1024xf32, #tpu.memory_space<vmem>>, vector<1x1024xf32>
    %4 = vector.broadcast %3 : vector<1x1024xf32> to vector<16x1024xf32>
    %5 = arith.addf %2, %4 : vector<16x1024xf32>
    %c0_5 = arith.constant 0 : index
    %c0_6 = arith.constant 0 : index
    %6 = vector.load %arg4[%c0_5, %c0_6] : memref<1x1024xf32, #tpu.memory_space<vmem>>, vector<1x1024xf32>
    %7 = vector.broadcast %6 : vector<1x1024xf32> to vector<16x1024xf32>
    %8 = arith.mulf %5, %7 : vector<16x1024xf32>
    %cst_7 = arith.constant 0.000000e+00 : f32
    %9 = vector.broadcast %cst_7 : f32 to vector<16x1024xf32>
    %10 = arith.maximumf %8, %9 : vector<16x1024xf32>
    %11 = arith.truncf %10 : vector<16x1024xf32> to vector<16x1024xbf16>
    %c0_8 = arith.constant 0 : index
    %c0_9 = arith.constant 0 : index
    %12 = vector.load %arg5[%c0_8, %c0_9] : memref<1024x128xbf16, #tpu.memory_space<vmem>>, vector<1024x128xbf16>
    %cst_10 = arith.constant dense<0.000000e+00> : vector<16x128xf32>
    %13 = tpu.matmul %11, %12, %cst_10 {dimension_numbers = #tpu.dot_dimension_numbers<[1], [0], [0], [1], [0, 0, 1, 1], [], []>} : vector<16x1024xbf16>, vector<1024x128xbf16>, vector<16x128xf32> -> vector<16x128xf32>
    %c0_11 = arith.constant 0 : index
    %c0_12 = arith.constant 0 : index
    %14 = vector.load %arg6[%c0_11, %c0_12] : memref<1x128xf32, #tpu.memory_space<vmem>>, vector<1x128xf32>
    %15 = vector.broadcast %14 : vector<1x128xf32> to vector<16x128xf32>
    %16 = arith.addf %13, %15 : vector<16x128xf32>
    %c0_13 = arith.constant 0 : index
    %c0_14 = arith.constant 0 : index
    %17 = vector.load %arg7[%c0_13, %c0_14] : memref<1x128xf32, #tpu.memory_space<vmem>>, vector<1x128xf32>
    %18 = vector.broadcast %17 : vector<1x128xf32> to vector<16x128xf32>
    %19 = arith.mulf %16, %18 : vector<16x128xf32>
    %c0_15 = arith.constant 0 : index
    %c0_16 = arith.constant 0 : index
    %20 = vector.load %arg8[%c0_15, %c0_16] : memref<16x128xf32, #tpu.memory_space<vmem>>, vector<16x128xf32>
    tpu.vector_store %arg8[%c0_15, %c0_16], %19 {strides = array<i32>} : memref<16x128xf32, #tpu.memory_space<vmem>>, vector<16x128xf32>,
    return
  }
  func.func @transform_0(%arg0: i32) -> (i32, i32) {
    %c0_i32 = arith.constant 0 : i32
    %c0_i32_0 = arith.constant 0 : i32
    return %arg0, %c0_i32 : i32, i32
  }
  func.func @transform_1(%arg0: i32) -> (i32, i32) {
    %c0_i32 = arith.constant 0 : i32
    %c0_i32_0 = arith.constant 0 : i32
    %c0_i32_1 = arith.constant 0 : i32
    return %c0_i32, %c0_i32_0 : i32, i32
  }
  func.func @transform_2(%arg0: i32) -> (i32, i32) {
    %c0_i32 = arith.constant 0 : i32
    %c0_i32_0 = arith.constant 0 : i32
    %c0_i32_1 = arith.constant 0 : i32
    return %c0_i32, %c0_i32_0 : i32, i32
  }
  func.func @transform_3(%arg0: i32) -> (i32, i32) {
    %c0_i32 = arith.constant 0 : i32
    %c0_i32_0 = arith.constant 0 : i32
    %c0_i32_1 = arith.constant 0 : i32
    return %c0_i32, %c0_i32_0 : i32, i32
  }
  func.func @transform_4(%arg0: i32) -> (i32, i32) {
    %c0_i32 = arith.constant 0 : i32
    %c0_i32_0 = arith.constant 0 : i32
    %c0_i32_1 = arith.constant 0 : i32
    return %c0_i32, %c0_i32_0 : i32, i32
  }
  func.func @transform_5(%arg0: i32) -> (i32, i32) {
    %c0_i32 = arith.constant 0 : i32
    %c0_i32_0 = arith.constant 0 : i32
    %c0_i32_1 = arith.constant 0 : i32
    return %c0_i32, %c0_i32_0 : i32, i32
  }
  func.func @transform_6(%arg0: i32) -> (i32, i32) {
    %c0_i32 = arith.constant 0 : i32
    %c0_i32_0 = arith.constant 0 : i32
    %c0_i32_1 = arith.constant 0 : i32
    return %c0_i32, %c0_i32_0 : i32, i32
  }
  func.func @transform_7(%arg0: i32) -> (i32, i32) {
    %c0_i32 = arith.constant 0 : i32
    %c0_i32_0 = arith.constant 0 : i32
    return %arg0, %c0_i32 : i32, i32
  }
}

module attributes {stable_mosaic.version = 11 : i64} {
  func.func @_conv_stage_kernel(%arg0: i32, %arg1: memref<16x640xbf16, #tpu.memory_space<vmem>>, %arg2: memref<640x128xbf16, #tpu.memory_space<vmem>>, %arg3: memref<16x1xf32, #tpu.memory_space<vmem>>, %arg4: memref<16x1xf32, #tpu.memory_space<vmem>>, %arg5: memref<16x128xbf16, #tpu.memory_space<vmem>>) attributes {dimension_semantics = [#tpu.dimension_semantics<parallel>], iteration_bounds = array<i64: 1>, scalar_prefetch = 0 : i64, scratch_operands = 0 : i64, tpu.core_type = #tpu.core_type<tc>, window_params = [{transform_indices = @transform_0, window_bounds = array<i64: 16, 640>}, {pipeline_mode = #tpu.pipeline_mode<synchronous>, transform_indices = @transform_1, window_bounds = array<i64: 640, 128>}, {transform_indices = @transform_2, window_bounds = array<i64: 16, 1>}, {transform_indices = @transform_3, window_bounds = array<i64: 16, 1>}, {transform_indices = @transform_4, window_bounds = array<i64: 16, 128>}]} {
    %c0 = arith.constant 0 : index
    %c0_0 = arith.constant 0 : index
    %0 = vector.load %arg1[%c0, %c0_0] : memref<16x640xbf16, #tpu.memory_space<vmem>>, vector<16x640xbf16>
    %c0_1 = arith.constant 0 : index
    %c0_2 = arith.constant 0 : index
    %1 = vector.load %arg2[%c0_1, %c0_2] : memref<640x128xbf16, #tpu.memory_space<vmem>>, vector<640x128xbf16>
    %cst = arith.constant dense<0.000000e+00> : vector<16x128xf32>
    %2 = tpu.matmul %0, %1, %cst {dimension_numbers = #tpu.dot_dimension_numbers<[1], [0], [0], [1], [0, 0, 1, 1], [], []>} : vector<16x640xbf16>, vector<640x128xbf16>, vector<16x128xf32> -> vector<16x128xf32>
    %c0_3 = arith.constant 0 : index
    %c0_4 = arith.constant 0 : index
    %3 = vector.load %arg3[%c0_3, %c0_4] : memref<16x1xf32, #tpu.memory_space<vmem>>, vector<16x1xf32>
    %4 = vector.broadcast %3 : vector<16x1xf32> to vector<16x128xf32>
    %5 = arith.addf %2, %4 : vector<16x128xf32>
    %c0_5 = arith.constant 0 : index
    %c0_6 = arith.constant 0 : index
    %6 = vector.load %arg4[%c0_5, %c0_6] : memref<16x1xf32, #tpu.memory_space<vmem>>, vector<16x1xf32>
    %7 = vector.broadcast %6 : vector<16x1xf32> to vector<16x128xf32>
    %8 = arith.mulf %5, %7 : vector<16x128xf32>
    %cst_7 = arith.constant 0.000000e+00 : f32
    %9 = vector.broadcast %cst_7 : f32 to vector<16x128xf32>
    %10 = arith.maximumf %8, %9 : vector<16x128xf32>
    %11 = arith.truncf %10 : vector<16x128xf32> to vector<16x128xbf16>
    %c0_8 = arith.constant 0 : index
    %c0_9 = arith.constant 0 : index
    %12 = vector.load %arg5[%c0_8, %c0_9] : memref<16x128xbf16, #tpu.memory_space<vmem>>, vector<16x128xbf16>
    tpu.vector_store %arg5[%c0_8, %c0_9], %11 {strides = array<i32>} : memref<16x128xbf16, #tpu.memory_space<vmem>>, vector<16x128xbf16>,
    return
  }
  func.func @transform_0(%arg0: i32) -> (i32, i32) {
    %c0_i32 = arith.constant 0 : i32
    %c0_i32_0 = arith.constant 0 : i32
    return %arg0, %c0_i32 : i32, i32
  }
  func.func @transform_1(%arg0: i32) -> (i32, i32) {
    %c0_i32 = arith.constant 0 : i32
    %c0_i32_0 = arith.constant 0 : i32
    %c0_i32_1 = arith.constant 0 : i32
    return %c0_i32, %c0_i32_0 : i32, i32
  }
  func.func @transform_2(%arg0: i32) -> (i32, i32) {
    %c0_i32 = arith.constant 0 : i32
    %c0_i32_0 = arith.constant 0 : i32
    return %arg0, %c0_i32 : i32, i32
  }
  func.func @transform_3(%arg0: i32) -> (i32, i32) {
    %c0_i32 = arith.constant 0 : i32
    %c0_i32_0 = arith.constant 0 : i32
    return %arg0, %c0_i32 : i32, i32
  }
  func.func @transform_4(%arg0: i32) -> (i32, i32) {
    %c0_i32 = arith.constant 0 : i32
    %c0_i32_0 = arith.constant 0 : i32
    return %arg0, %c0_i32 : i32, i32
  }
}

</mosaic_0001>

<bundles_post_ra>
// kernel: ewc_dqn_forward.4
= control target key start
LH: loop header
LB: loop body
LE: loop exit
PB: predicated region body
PF: predicated region fallthrough
CT: control target
= control target key end

     0   :  { %s931_s15 = smov 0   ;;  %s1031_s0 = inlined_call_operand.vmem [shape: bf16[128,256], index: 0, kind: input, shape index: {}]   ;;  %s1032_s1 = inlined_call_operand.vmem [shape: bf16[256,128], index: 1, kind: input, shape index: {}]   ;;  %s1033_s2 = inlined_call_operand.vmem [shape: f32[128,1], index: 2, kind: input, shape index: {}]   ;;  %s1034_s3 = inlined_call_operand.vmem [shape: f32[128,1], index: 3, kind: input, shape index: {}]   ;;  %s1035_s4 = inlined_call_operand.vmem [shape: bf16[128,128], index: 4, kind: output, shape index: {}]  }
   0x1 LB: > { %s722_s16 = sadd.s32 4294967295, %s903_s15   ;;  %p726_p0 = scmp.ge.s32.totalorder %s903_s15, 1  ;;  %s903_s15 = sphi %s931_s15, %s14_s15  }
   0x2   : > { %p186_p1 = scmp.lt.s32.totalorder %s903_s15, 3 }
   0x4   : > { %p187_p2 = pnand %p726_p0, %p186_p1 }
   0x5   : > { %v869_v0 = vld [vmem:[%s1032_s1 + $0x40] sm:$0xff] (!%p187_p2)   ;;  %s727_s19 = sshll.u32 (!%p187_p2), %s722_s16, 3  ;;  %v871_v2 = vld [vmem:[%s1032_s1 + $0x48] sm:$0xff] (!%p187_p2)   ;;  %v873_v4 = vld [vmem:[%s1032_s1 + $0x50] sm:$0xff] (!%p187_p2)   ;;  %v905_v5 = vmov (!%p187_p2), 0  }
   0x6   : > { %190 = sbr.rel (%p187_p2) target bundleno = 273 (0x111), region = 36  ;;  %v870_v1 = vld [vmem:[%s1032_s1] sm:$0xff] (!%p187_p2)   ;;  %802 = vmatprep.subr.bf16.mxu0 (!%p187_p2), %v869_v0  ;;  %842 = vmatprep.subr.bf16.mxu1 (!%p187_p2), %v869_v0  ;;  %v872_v3 = vld [vmem:[%s1032_s1 + $0x8] sm:$0xff] (!%p187_p2)   ;;  %p224_p3 = scmp.lt.s32.totalorder (!%p187_p2), %s727_s19, 15  ;;  %v874_v6 = vld [vmem:[%s1032_s1 + $0x10] sm:$0xff] (!%p187_p2)  }
   0x7   : > { %803 = vmatpush3.bf16.msra.mxu0 (!%p187_p2), %v870_v1  ;;  %850 = vmatpush3.bf16.msra.mxu1 (!%p187_p2), %v870_v1  ;;  %v875_v7 = vld [vmem:[%s1032_s1 + $0x58] sm:$0xff] (!%p187_p2)   ;;  %v877_v9 = vld [vmem:[%s1032_s1 + $0x60] sm:$0xff] (!%p187_p2)   ;;  %v879_v11 = vld [vmem:[%s1032_s1 + $0x68] sm:$0xff] (!%p187_p2)  }
   0x8   : > { %804 = vmatprep.subr.bf16.mxu0 (!%p187_p2), %v871_v2  ;;  %843 = vmatprep.subr.bf16.mxu1 (!%p187_p2), %v871_v2  ;;  %v876_v8 = vld [vmem:[%s1032_s1 + $0x18] sm:$0xff] (!%p187_p2)   ;;  %v878_v10 = vld [vmem:[%s1032_s1 + $0x20] sm:$0xff] (!%p187_p2)   ;;  %v880_v14 = vld [vmem:[%s1032_s1 + $0x28] sm:$0xff] (!%p187_p2)  }
   0x9   : > { %868 = vset.pattern.permute.xlu1 (!%p187_p2), %v905_v5  ;;  %867 = vset.pattern.permute.xlu0 (!%p187_p2), %v905_v5  ;;  %v881_v15 = vld [vmem:[%s1032_s1 + $0x70] sm:$0xff] (!%p187_p2)   ;;  %v883_v21 = vld [vmem:[%s1032_s1 + $0x78] sm:$0xff] (!%p187_p2)  }
   0xa   : > { %v882_v18 = vld [vmem:[%s1032_s1 + $0x30] sm:$0xff] (!%p187_p2)   ;;  %v884_v22 = vld [vmem:[%s1032_s1 + $0x38] sm:$0xff] (!%p187_p2)  }
   0xb   : > { %805 = vmatpush3.bf16.msra.mxu0 (!%p187_p2), %v872_v3  ;;  %851 = vmatpush3.bf16.msra.mxu1 (!%p187_p2), %v872_v3 }
   0xc   : > { %806 = vmatprep.subr.bf16.mxu0 (!%p187_p2), %v873_v4  ;;  %844 = vmatprep.subr.bf16.mxu1 (!%p187_p2), %v873_v4 }
   0xd   : > { %s1037_s19 = smov (!%p224_p3, %s727_s19), 15 }
   0xe   : > { %s966_s8 = sshll.u32 %s1037_s19, 3 }
   0xf   : > { %807 = vmatpush3.bf16.msra.mxu0 %v874_v6  ;;  %852 = vmatpush3.bf16.msra.mxu1 %v874_v6  ;;  %s975_s13 = scalar_lea.vmem %s1031_s0, %s966_s8  ;;  %s989_s22 = scalar_lea.vmem %s1033_s2, %s966_s8 }
  0x10   : > { %808 = vmatprep.subr.bf16.mxu0 %v875_v7  ;;  %845 = vmatprep.subr.bf16.mxu1 %v875_v7  ;;  %v887_v12 = vld [vmem:[%s975_s13 + $0x4] ss:$8 sps:$4 sm:$0xff]   ;;  %v291_v16 = vld [vmem:[%s989_s22 + $0x10] sm:$0xff]  ;;  %v292_v19 = vld [vmem:[%s989_s22 + $0x18] sm:$0xff]  ;;  %s240_s10 = scalar_lea.vmem %s1034_s3, %s966_s8  ;;  %s735_s8 = sshll.u32 %s1037_s19, 2 }
  0x11   : > { %v890_v13 = vld [vmem:[%s975_s13 + $0x24] ss:$8 sps:$4 sm:$0xff]   ;;  %505 = vmatprep.mubr.bf16.mxu0 %v887_v12  ;;  %309 = vperm.xlu1 %868, %v291_v16   ;;  %v885_v25 = vld [vmem:[%s975_s13] ss:$8 sps:$4 sm:$0xff]   ;;  %v891_v27 = vld [vmem:[%s975_s13 + $0x14] ss:$8 sps:$4 sm:$0xff]  }
  0x12   : > { %521 = vmatprep.mubr.bf16.mxu1 %v890_v13  ;;  %v289_v17 = vld [vmem:[%s989_s22] sm:$0xff]  ;;  %v290_v20 = vld [vmem:[%s989_s22 + $0x8] sm:$0xff]  ;;  %v893_v28 = vld [vmem:[%s975_s13 + $0x34] ss:$8 sps:$4 sm:$0xff]  }
  0x13   : > { %809 = vmatpush3.bf16.msra.mxu0 %v876_v8  ;;  %853 = vmatpush3.bf16.msra.mxu1 %v876_v8  ;;  %v294_v23 = vld [vmem:[%s989_s22 + $0x28] sm:$0xff]  ;;  %v293_v24 = vld [vmem:[%s989_s22 + $0x20] sm:$0xff]  ;;  %v296_v29 = vld [vmem:[%s989_s22 + $0x38] sm:$0xff] }
  0x14   : > { %810 = vmatprep.subr.bf16.mxu0 %v877_v9  ;;  %846 = vmatprep.subr.bf16.mxu1 %v877_v9  ;;  %v888_v26 = vld [vmem:[%s975_s13 + $0x20] ss:$8 sps:$4 sm:$0xff]   ;;  %v295_v30 = vld [vmem:[%s989_s22 + $0x30] sm:$0xff]  ;;  %v541_v35 = vld [vmem:[%s240_s10 + $0x18] sm:$0xff] }
  0x15   : > { %299 = vperm.xlu0 %867, %v289_v17   ;;  %314 = vperm.xlu1 %868, %v292_v19   ;;  %v539_v31 = vld [vmem:[%s240_s10 + $0x8] sm:$0xff]  ;;  %v538_v32 = vld [vmem:[%s240_s10] sm:$0xff]  ;;  %v895_v33 = vld [vmem:[%s975_s13 + $0x10] ss:$8 sps:$4 sm:$0xff]  }
  0x16   : > { %v896_v34 = vld [vmem:[%s975_s13 + $0x30] ss:$8 sps:$4 sm:$0xff]   ;;  %v543_v37 = vld [vmem:[%s240_s10 + $0x28] sm:$0xff]  ;;  %v542_v38 = vld [vmem:[%s240_s10 + $0x20] sm:$0xff]  ;;  %s246_s13 = scalar_lea.vmem %s1035_s4, %s735_s8 }
  0x17   : > { %811 = vmatpush3.bf16.msra.mxu0 %v878_v10  ;;  %854 = vmatpush3.bf16.msra.mxu1 %v878_v10  ;;  %v540_v36 = vld [vmem:[%s240_s10 + $0x10] sm:$0xff]  ;;  %v545_v39 = vld [vmem:[%s240_s10 + $0x38] sm:$0xff] }
  0x18   : > { %812 = vmatprep.subr.bf16.mxu0 %v879_v11  ;;  %847 = vmatprep.subr.bf16.mxu1 %v879_v11  ;;  %v544_v40 = vld [vmem:[%s240_s10 + $0x30] sm:$0xff] }
  0x19   : > { %304 = vperm.xlu0 %867, %v290_v20   ;;  %324 = vperm.xlu1 %868, %v294_v23  }
  0x1b   : > { %813 = vmatpush3.bf16.msra.mxu0 %v880_v14  ;;  %855 = vmatpush3.bf16.msra.mxu1 %v880_v14 }
  0x1c   : > { %814 = vmatprep.subr.bf16.mxu0 %v881_v15  ;;  %848 = vmatprep.subr.bf16.mxu1 %v881_v15 }
  0x1d   : > { %319 = vperm.xlu0 %867, %v293_v24   ;;  %334 = vperm.xlu1 %868, %v296_v29  }
  0x1f   : > { %815 = vmatpush3.bf16.msra.mxu0 %v882_v18  ;;  %856 = vmatpush3.bf16.msra.mxu1 %v882_v18 }
  0x20   : > { %816 = vmatprep.subr.bf16.mxu0 %v883_v21  ;;  %849 = vmatprep.subr.bf16.mxu1 %v883_v21 }
  0x21   : > { %329 = vperm.xlu0 %867, %v295_v30   ;;  %553 = vperm.xlu1 %868, %v539_v31  }
  0x23   : > { %817 = vmatpush3.bf16.msra.mxu0 %v884_v22  ;;  %857 = vmatpush3.bf16.msra.mxu1 %v884_v22 }
  0x25   : > { %548 = vperm.xlu0 %867, %v538_v32   ;;  %563 = vperm.xlu1 %868, %v541_v35  }
  0x26   : > { %506 = vmatmul.mubr.bf16.vlgmr.msra.gmra.mrb[0].mxu0 %v885_v25  ;;  %522 = vmatmul.mubr.bf16.vlgmr.msra.gmra.mrb[0].mxu1 %v888_v26 }
  0x27   : > { %513 = vmatprep.mubr.bf16.mxu0 %v891_v27  ;;  %529 = vmatprep.mubr.bf16.mxu1 %v893_v28 }
  0x29   : > { %558 = vperm.xlu0 %867, %v540_v36   ;;  %573 = vperm.xlu1 %868, %v543_v37  }
  0x2d   : > { %568 = vperm.xlu0 %867, %v542_v38   ;;  %583 = vperm.xlu1 %868, %v545_v39  }
  0x2e   : > { %514 = vmatmul.mubr.bf16.gmra.mrb[4].mxu0 %v895_v33  ;;  %530 = vmatmul.mubr.bf16.gmra.mrb[4].mxu1 %v896_v34 }
  0x31   : > { %578 = vperm.xlu0 %867, %v544_v40  }
  0x90   : > { %v310_v41 = vpop.permute.xlu1 %309 }
  0x94   : > { %v300_v42 = vpop.permute.xlu0 %299  ;;  %v315_v43 = vpop.permute.xlu1 %314 }
  0x98   : > { %v305_v44 = vpop.permute.xlu0 %304  ;;  %v325_v45 = vpop.permute.xlu1 %324 }
  0x9c   : > { %v320_v46 = vpop.permute.xlu0 %319  ;;  %v335_v47 = vpop.permute.xlu1 %334 }
  0xa0   : > { %v330_v48 = vpop.permute.xlu0 %329  ;;  %v554_v49 = vpop.permute.xlu1 %553 }
  0xa4   : > { %v549_v50 = vpop.permute.xlu0 %548  ;;  %v564_v51 = vpop.permute.xlu1 %563 }
  0xa8   : > { %v559_v52 = vpop.permute.xlu0 %558  ;;  %v574_v8 = vpop.permute.xlu1 %573 }
  0xac   : > { %v569_v3 = vpop.permute.xlu0 %568  ;;  %v584_v36 = vpop.permute.xlu1 %583 }
  0xb0   : > { %v579_v31 = vpop.permute.xlu0 %578 }
  0xf9   : > { %v818_v53 = vpop.f32.mrb[0].mxu0  ;;  %v830_v54 = vpop.f32.mrb[0].mxu1 }
  0xfa   : > { %v819_v55 = vpop.f32.mrb[1].mxu0  ;;  %v831_v56 = vpop.f32.mrb[1].mxu1 }
  0xfb   : > { %v820_v57 = vadd.f32 %v819_v55, %v818_v53  ;;  %v832_v58 = vadd.f32 %v831_v56, %v830_v54  ;;  %v821_v59 = vpop.f32.mrb[2].mxu0  ;;  %v833_v60 = vpop.f32.mrb[2].mxu1 }
  0xfc   : > { %v822_v61 = vpop.f32.mrb[3].mxu0  ;;  %v834_v62 = vpop.f32.mrb[3].mxu1 }
  0xfd   : > { %v508_v63 = vadd.f32 %v820_v57, %v300_v42  ;;  %v524_v0 = vadd.f32 %v832_v58, %v320_v46  ;;  %v823_v1 = vadd.f32 %v822_v61, %v821_v59  ;;  %v835_v2 = vadd.f32 %v834_v62, %v833_v60 }
  0xff   : > { %v586_v4 = vmul.f32 %v549_v50, %v508_v63  ;;  %v590_v5 = vmul.f32 %v569_v3, %v524_v0  ;;  %v511_v6 = vadd.f32 %v823_v1, %v305_v44  ;;  %v527_v7 = vadd.f32 %v835_v2, %v325_v45 }
 0x101   : > { %v587_v9 = vmul.f32 %v554_v49, %v511_v6  ;;  %v591_v10 = vmul.f32 %v574_v8, %v527_v7  ;;  %v824_v11 = vpop.f32.mrb[4].mxu0  ;;  %v836_v12 = vpop.f32.mrb[4].mxu1  ;;  %v594_v13 = vmax.f32 %v586_v4, 0.0  ;;  %v598_v14 = vmax.f32 %v590_v5, 0.0 }
 0x102   : > { %v825_v15 = vpop.f32.mrb[5].mxu0  ;;  %v837_v16 = vpop.f32.mrb[5].mxu1 }
 0x103   : > { %v595_v17 = vmax.f32 %v587_v9, 0.0  ;;  %v599_v18 = vmax.f32 %v591_v10, 0.0  ;;  %v826_v19 = vadd.f32 %v825_v15, %v824_v11  ;;  %v838_v20 = vadd.f32 %v837_v16, %v836_v12  ;;  %v827_v21 = vpop.f32.mrb[6].mxu0  ;;  %v839_v22 = vpop.f32.mrb[6].mxu1 }
 0x104   : > { %v828_v23 = vpop.f32.mrb[7].mxu0  ;;  %v840_v24 = vpop.f32.mrb[7].mxu1 }
 0x105   : > { %v782_v25 = vpack.c.bf16 %v595_v17, %v594_v13  ;;  %v792_v26 = vpack.c.bf16 %v599_v18, %v598_v14  ;;  %v516_v27 = vadd.f32 %v826_v19, %v310_v41  ;;  %v532_v28 = vadd.f32 %v838_v20, %v330_v48 }
 0x106   : > { %v829_v29 = vadd.f32 %v828_v23, %v827_v21  ;;  %v841_v30 = vadd.f32 %v840_v24, %v839_v22 }
 0x107   : > { %783 = vst [vmem:[%s246_s13] sm:$0xff] %v782_v25   ;;  %800 = vst [vmem:[%s246_s13 + $0x10] sm:$0xff] %v792_v26   ;;  %v588_v32 = vmul.f32 %v559_v52, %v516_v27  ;;  %v592_v33 = vmul.f32 %v579_v31, %v532_v28 }
 0x108   : > { %v519_v34 = vadd.f32 %v829_v29, %v315_v43  ;;  %v535_v35 = vadd.f32 %v841_v30, %v335_v47 }
 0x109   : > { %v596_v39 = vmax.f32 %v588_v32, 0.0  ;;  %v600_v40 = vmax.f32 %v592_v33, 0.0 }
 0x10a   : > { %v589_v37 = vmul.f32 %v564_v51, %v519_v34  ;;  %v593_v38 = vmul.f32 %v584_v36, %v535_v35 }
 0x10c   : > { %v597_v42 = vmax.f32 %v589_v37, 0.0  ;;  %v601_v44 = vmax.f32 %v593_v38, 0.0 }
 0x10e   : > { %v787_v45 = vpack.c.bf16 %v597_v42, %v596_v39  ;;  %v797_v46 = vpack.c.bf16 %v601_v44, %v600_v40 }
 0x110   : > { %799 = vst [vmem:[%s246_s13 + $0x8] sm:$0xff] %v787_v45   ;;  %801 = vst [vmem:[%s246_s13 + $0x18] sm:$0xff] %v797_v46  }
 0x111 PF: > { %s14_s15 = sadd.s32 1, %s903_s15  }
 0x112   : > { %p11_p4 = scmp.ge.s32.totalorder %s14_s15, 4  }
 0x114   :  { %13 = sbr.rel (!%p11_p4) target bundleno = 1 (0x1), region = 72 }

// kernel: ewc_dqn_forward.5
= control target key start
LH: loop header
LB: loop body
LE: loop exit
PB: predicated region body
PF: predicated region fallthrough
CT: control target
= control target key end

     0   :  { %s918_s15 = smov 0   ;;  %s1044_s0 = inlined_call_operand.vmem [shape: bf16[32,512], index: 0, kind: input, shape index: {}]   ;;  %s1045_s1 = inlined_call_operand.vmem [shape: bf16[512,128], index: 1, kind: input, shape index: {}]   ;;  %s1046_s2 = inlined_call_operand.vmem [shape: f32[32,1], index: 2, kind: input, shape index: {}]   ;;  %s1047_s3 = inlined_call_operand.vmem [shape: f32[32,1], index: 3, kind: input, shape index: {}]   ;;  %s1048_s4 = inlined_call_operand.vmem [shape: bf16[32,128], index: 4, kind: output, shape index: {}]  }
   0x1 LB: > { %s729_s16 = sadd.s32 4294967295, %s890_s15   ;;  %p733_p0 = scmp.ge.s32.totalorder %s890_s15, 1  ;;  %s890_s15 = sphi %s918_s15, %s14_s15  }
   0x2   : > { %p186_p1 = scmp.lt.s32.totalorder %s890_s15, 3 }
   0x4   : > { %p187_p2 = pnand %p733_p0, %p186_p1 }
   0x5   : > { %v846_v0 = vld [vmem:[%s1045_s1 + $0x40] sm:$0xff] (!%p187_p2)   ;;  %v892_v4 = vmov (!%p187_p2), 0   ;;  %v850_v5 = vld [vmem:[%s1045_s1 + $0x48] sm:$0xff] (!%p187_p2)   ;;  %v854_v9 = vld [vmem:[%s1045_s1 + $0x50] sm:$0xff] (!%p187_p2)   ;;  %s734_s25 = sshll.u32 (!%p187_p2), %s729_s16, 1 }
   0x6   : > { %190 = sbr.rel (%p187_p2) target bundleno = 267 (0x10b), region = 36  ;;  %v847_v1 = vld [vmem:[%s1045_s1 + $0xc0] sm:$0xff] (!%p187_p2)   ;;  %791 = vmatprep.subr.bf16.mxu0 (!%p187_p2), %v846_v0  ;;  %844 = vset.pattern.permute.xlu0 (!%p187_p2), %v892_v4  ;;  %v851_v6 = vld [vmem:[%s1045_s1 + $0xc8] sm:$0xff] (!%p187_p2)   ;;  %v855_v10 = vld [vmem:[%s1045_s1 + $0xd0] sm:$0xff] (!%p187_p2)   ;;  %p224_p3 = scmp.lt.s32.totalorder (!%p187_p2), %s734_s25, 3 }
   0x7   : > { %v848_v2 = vld [vmem:[%s1045_s1] sm:$0xff] (!%p187_p2)   ;;  %813 = vmatprep.subr.bf16.mxu1 (!%p187_p2), %v847_v1  ;;  %845 = vset.pattern.permute.xlu1 (!%p187_p2), %v892_v4  ;;  %v852_v7 = vld [vmem:[%s1045_s1 + $0x8] sm:$0xff] (!%p187_p2)   ;;  %v856_v11 = vld [vmem:[%s1045_s1 + $0x10] sm:$0xff] (!%p187_p2)  }
   0x8   : > { %v849_v3 = vld [vmem:[%s1045_s1 + $0x80] sm:$0xff] (!%p187_p2)   ;;  %792 = vmatpush3.bf16.msra.mxu0 (!%p187_p2), %v848_v2  ;;  %v853_v8 = vld [vmem:[%s1045_s1 + $0x88] sm:$0xff] (!%p187_p2)   ;;  %v857_v12 = vld [vmem:[%s1045_s1 + $0x90] sm:$0xff] (!%p187_p2)  }
   0x9   : > { %814 = vmatpush3.bf16.msra.mxu1 (!%p187_p2), %v849_v3  ;;  %793 = vmatprep.subr.bf16.mxu0 (!%p187_p2), %v850_v5  ;;  %v858_v13 = vld [vmem:[%s1045_s1 + $0x58] sm:$0xff] (!%p187_p2)   ;;  %v862_v17 = vld [vmem:[%s1045_s1 + $0x60] sm:$0xff] (!%p187_p2)   ;;  %v866_v21 = vld [vmem:[%s1045_s1 + $0x68] sm:$0xff] (!%p187_p2)  }
   0xa   : > { %815 = vmatprep.subr.bf16.mxu1 (!%p187_p2), %v851_v6  ;;  %v859_v14 = vld [vmem:[%s1045_s1 + $0xd8] sm:$0xff] (!%p187_p2)   ;;  %v863_v18 = vld [vmem:[%s1045_s1 + $0xe0] sm:$0xff] (!%p187_p2)   ;;  %v867_v22 = vld [vmem:[%s1045_s1 + $0xe8] sm:$0xff] (!%p187_p2)  }
   0xb   : > { %v860_v15 = vld [vmem:[%s1045_s1 + $0x18] sm:$0xff] (!%p187_p2)   ;;  %v864_v19 = vld [vmem:[%s1045_s1 + $0x20] sm:$0xff] (!%p187_p2)   ;;  %v868_v23 = vld [vmem:[%s1045_s1 + $0x28] sm:$0xff] (!%p187_p2)  }
   0xc   : > { %794 = vmatpush3.bf16.msra.mxu0 (!%p187_p2), %v852_v7  ;;  %v861_v16 = vld [vmem:[%s1045_s1 + $0x98] sm:$0xff] (!%p187_p2)   ;;  %v865_v20 = vld [vmem:[%s1045_s1 + $0xa0] sm:$0xff] (!%p187_p2)   ;;  %v869_v24 = vld [vmem:[%s1045_s1 + $0xa8] sm:$0xff] (!%p187_p2)  }
   0xd   : > { %816 = vmatpush3.bf16.msra.mxu1 %v853_v8  ;;  %795 = vmatprep.subr.bf16.mxu0 %v854_v9  ;;  %s1050_s25 = smov (!%p224_p3, %s734_s25), 3  ;;  %v870_v25 = vld [vmem:[%s1045_s1 + $0x70] sm:$0xff]   ;;  %v874_v29 = vld [vmem:[%s1045_s1 + $0x78] sm:$0xff]  }
   0xe   : > { %817 = vmatprep.subr.bf16.mxu1 %v855_v10  ;;  %v871_v26 = vld [vmem:[%s1045_s1 + $0xf0] sm:$0xff]   ;;  %s783_s23 = sshll.u32 %s1050_s25, 4  ;;  %s738_s29 = sshll.u32 %s1050_s25, 3  ;;  %v875_v30 = vld [vmem:[%s1045_s1 + $0xf8] sm:$0xff]  }
   0xf   : > { %v872_v27 = vld [vmem:[%s1045_s1 + $0x30] sm:$0xff]   ;;  %s228_s16 = scalar_lea.vmem %s1044_s0, %s783_s23  ;;  %v876_v31 = vld [vmem:[%s1045_s1 + $0x38] sm:$0xff]   ;;  %s234_s14 = scalar_lea.vmem %s1046_s2, %s738_s29 }
  0x10   : > { %796 = vmatpush3.bf16.msra.mxu0 %v856_v11  ;;  %v873_v28 = vld [vmem:[%s1045_s1 + $0xb0] sm:$0xff]   ;;  %v877_v32 = vld [vmem:[%s1045_s1 + $0xb8] sm:$0xff]   ;;  %s240_s19 = scalar_lea.vmem %s1047_s3, %s738_s29  ;;  %v317_v37 = vld [vmem:[%s234_s14] sm:$0xff]  ;;  %s742_s20 = sshll.u32 %s1050_s25, 2 }
  0x11   : > { %818 = vmatpush3.bf16.msra.mxu1 %v857_v12  ;;  %797 = vmatprep.subr.bf16.mxu0 %v858_v13  ;;  %v878_v33 = vld [vmem:[%s228_s16] ss:$16 sps:$4 sm:$0xff]   ;;  %v880_v34 = vld [vmem:[%s228_s16 + $0x4] ss:$16 sps:$4 sm:$0xff]   ;;  %v881_v35 = vld [vmem:[%s228_s16 + $0x8] ss:$16 sps:$4 sm:$0xff]   ;;  %s246_s23 = scalar_lea.vmem %s1048_s4, %s742_s20 }
  0x12   : > { %819 = vmatprep.subr.bf16.mxu1 %v859_v14  ;;  %v883_v36 = vld [vmem:[%s228_s16 + $0xc] ss:$16 sps:$4 sm:$0xff]   ;;  %573 = vmatprep.mubr.bf16.mxu0 %v880_v34  ;;  %v623_v38 = vld [vmem:[%s240_s19] sm:$0xff] }
  0x13   : > { %321 = vperm.xlu0 %844, %v317_v37   ;;  %614 = vmatprep.mubr.bf16.mxu1 %v883_v36  ;;  %v318_v39 = vld [vmem:[%s234_s14 + $0x8] sm:$0xff] }
  0x14   : > { %798 = vmatpush3.bf16.msra.mxu0 %v860_v15  ;;  %627 = vperm.xlu1 %845, %v623_v38   ;;  %v624_v40 = vld [vmem:[%s240_s19 + $0x8] sm:$0xff] }
  0x15   : > { %820 = vmatpush3.bf16.msra.mxu1 %v861_v16  ;;  %799 = vmatprep.subr.bf16.mxu0 %v862_v17 }
  0x16   : > { %821 = vmatprep.subr.bf16.mxu1 %v863_v18 }
  0x17   : > { %326 = vperm.xlu0 %844, %v318_v39  }
  0x18   : > { %800 = vmatpush3.bf16.msra.mxu0 %v864_v19  ;;  %632 = vperm.xlu1 %845, %v624_v40  }
  0x19   : > { %822 = vmatpush3.bf16.msra.mxu1 %v865_v20  ;;  %801 = vmatprep.subr.bf16.mxu0 %v866_v21 }
  0x1a   : > { %823 = vmatprep.subr.bf16.mxu1 %v867_v22 }
  0x1c   : > { %802 = vmatpush3.bf16.msra.mxu0 %v868_v23 }
  0x1d   : > { %824 = vmatpush3.bf16.msra.mxu1 %v869_v24  ;;  %803 = vmatprep.subr.bf16.mxu0 %v870_v25 }
  0x1e   : > { %825 = vmatprep.subr.bf16.mxu1 %v871_v26 }
  0x20   : > { %804 = vmatpush3.bf16.msra.mxu0 %v872_v27 }
  0x21   : > { %826 = vmatpush3.bf16.msra.mxu1 %v873_v28  ;;  %805 = vmatprep.subr.bf16.mxu0 %v874_v29 }
  0x22   : > { %827 = vmatprep.subr.bf16.mxu1 %v875_v30 }
  0x24   : > { %806 = vmatpush3.bf16.msra.mxu0 %v876_v31 }
  0x25   : > { %828 = vmatpush3.bf16.msra.mxu1 %v877_v32 }
  0x27   : > { %574 = vmatmul.mubr.bf16.vlgmr.msra.gmra.mrb[0].mxu0 %v878_v33 }
  0x28   : > { %615 = vmatmul.mubr.bf16.vlgmr.msra.gmra.mrb[0].mxu1 %v881_v35 }
  0x92   : > { %v322_v41 = vpop.permute.xlu0 %321 }
  0x93   : > { %v628_v43 = vpop.permute.xlu1 %627 }
  0x96   : > { %v327_v55 = vpop.permute.xlu0 %326 }
  0x97   : > { %v633_v61 = vpop.permute.xlu1 %632 }
  0xfa   : > { %v807_v42 = vpop.f32.mrb[0].mxu0 }
  0xfb   : > { %v829_v44 = vpop.f32.mrb[0].mxu1  ;;  %v808_v45 = vpop.f32.mrb[1].mxu0 }
  0xfc   : > { %v809_v46 = vadd.f32 %v808_v45, %v807_v42  ;;  %v830_v47 = vpop.f32.mrb[1].mxu1  ;;  %v810_v48 = vpop.f32.mrb[2].mxu0 }
  0xfd   : > { %v831_v49 = vadd.f32 %v830_v47, %v829_v44  ;;  %v832_v50 = vpop.f32.mrb[2].mxu1  ;;  %v811_v51 = vpop.f32.mrb[3].mxu0 }
  0xfe   : > { %v576_v52 = vadd.f32 %v809_v46, %v322_v41  ;;  %v812_v53 = vadd.f32 %v811_v51, %v810_v48  ;;  %v833_v54 = vpop.f32.mrb[3].mxu1 }
  0xff   : > { %v834_v56 = vadd.f32 %v833_v54, %v832_v50 }
 0x100   : > { %v617_v57 = vadd.f32 %v831_v49, %v576_v52  ;;  %v579_v58 = vadd.f32 %v812_v53, %v327_v55 }
 0x102   : > { %v635_v59 = vmul.f32 %v628_v43, %v617_v57  ;;  %v620_v60 = vadd.f32 %v834_v56, %v579_v58 }
 0x104   : > { %v636_v62 = vmul.f32 %v633_v61, %v620_v60  ;;  %v637_v63 = vmax.f32 %v635_v59, 0.0 }
 0x106   : > { %v638_v0 = vmax.f32 %v636_v62, 0.0 }
 0x108   : > { %v789_v1 = vpack.c.bf16 %v638_v0, %v637_v63 }
 0x10a   : > { %790 = vst [vmem:[%s246_s23] sm:$0xff] %v789_v1  }
 0x10b PF: > { %s14_s15 = sadd.s32 1, %s890_s15  }
 0x10c   : > { %p11_p4 = scmp.ge.s32.totalorder %s14_s15, 4  }
 0x10e   :  { %13 = sbr.rel (!%p11_p4) target bundleno = 1 (0x1), region = 72 }

// kernel: ewc_dqn_forward.6
= control target key start
LH: loop header
LB: loop body
LE: loop exit
PB: predicated region body
PF: predicated region fallthrough
CT: control target
= control target key end

     0   :  { %v714_v1 = vmov 0   ;;  %v715_v34 = vmov 0.0   ;;  %vm716_vm0 = vmmov 0   ;;  %s892_s1 = inlined_call_operand.vmem [shape: bf16[640,128], index: 1, kind: input, shape index: {}]   ;;  %s893_s0 = inlined_call_operand.vmem [shape: bf16[16,640], index: 0, kind: input, shape index: {}]   ;;  %s894_s2 = inlined_call_operand.vmem [shape: f32[16,1], index: 2, kind: input, shape index: {}]   ;;  %s895_s3 = inlined_call_operand.vmem [shape: f32[16,1], index: 3, kind: input, shape index: {}]   ;;  %s896_s4 = inlined_call_operand.vmem [shape: bf16[16,128], index: 4, kind: output, shape index: {}]  }
   0x1   :  { %v667_v0 = vld [vmem:[%s892_s1 + $0x40] sm:$0xff]   ;;  %665 = vset.pattern.permute.xlu0 %v714_v1  ;;  %666 = vset.pattern.permute.xlu1 %v714_v1  ;;  %v671_v5 = vld [vmem:[%s892_s1 + $0x48] sm:$0xff]   ;;  %v675_v9 = vld [vmem:[%s892_s1 + $0x50] sm:$0xff]  }
   0x2   :  { %v668_v2 = vld [vmem:[%s892_s1] sm:$0xff]   ;;  %589 = vmatprep.subr.bf16.mxu0 %v667_v0  ;;  %v672_v6 = vld [vmem:[%s892_s1 + $0x8] sm:$0xff]   ;;  %v676_v10 = vld [vmem:[%s892_s1 + $0x10] sm:$0xff]  }
   0x3   :  { %v669_v3 = vld [vmem:[%s892_s1 + $0xc0] sm:$0xff]   ;;  %590 = vmatpush3.bf16.msra.mxu0 %v668_v2  ;;  %v673_v7 = vld [vmem:[%s892_s1 + $0xc8] sm:$0xff]   ;;  %v677_v11 = vld [vmem:[%s892_s1 + $0xd0] sm:$0xff]  }
   0x4   :  { %v670_v4 = vld [vmem:[%s892_s1 + $0x80] sm:$0xff]   ;;  %611 = vmatprep.subr.bf16.mxu1 %v669_v3  ;;  %591 = vmatprep.subr.bf16.mxu0 %v671_v5  ;;  %v674_v8 = vld [vmem:[%s892_s1 + $0x88] sm:$0xff]   ;;  %v678_v12 = vld [vmem:[%s892_s1 + $0x90] sm:$0xff]  }
   0x5   :  { %612 = vmatpush3.bf16.msra.mxu1 %v670_v4  ;;  %v679_v13 = vld [vmem:[%s892_s1 + $0x58] sm:$0xff]   ;;  %v683_v17 = vld [vmem:[%s892_s1 + $0x60] sm:$0xff]   ;;  %v687_v21 = vld [vmem:[%s892_s1 + $0x68] sm:$0xff]  }
   0x6   :  { %613 = vmatprep.subr.bf16.mxu1 %v673_v7  ;;  %v680_v14 = vld [vmem:[%s892_s1 + $0x18] sm:$0xff]   ;;  %v684_v18 = vld [vmem:[%s892_s1 + $0x20] sm:$0xff]   ;;  %v688_v22 = vld [vmem:[%s892_s1 + $0x28] sm:$0xff]  }
   0x7   :  { %592 = vmatpush3.bf16.msra.mxu0 %v672_v6  ;;  %v681_v15 = vld [vmem:[%s892_s1 + $0xd8] sm:$0xff]   ;;  %v685_v19 = vld [vmem:[%s892_s1 + $0xe0] sm:$0xff]   ;;  %v689_v23 = vld [vmem:[%s892_s1 + $0xe8] sm:$0xff]  }
   0x8   :  { %593 = vmatprep.subr.bf16.mxu0 %v675_v9  ;;  %v682_v16 = vld [vmem:[%s892_s1 + $0x98] sm:$0xff]   ;;  %v686_v20 = vld [vmem:[%s892_s1 + $0xa0] sm:$0xff]   ;;  %v690_v24 = vld [vmem:[%s892_s1 + $0xa8] sm:$0xff]  }
   0x9   :  { %614 = vmatpush3.bf16.msra.mxu1 %v674_v8  ;;  %v691_v25 = vld [vmem:[%s892_s1 + $0x70] sm:$0xff]   ;;  %v695_v29 = vld [vmem:[%s892_s1 + $0x78] sm:$0xff]   ;;  %v704_v37 = vld [vmem:[%s893_s0 + $0xc] ss:$20 sps:$4 sm:$0xff]  }
   0xa   :  { %615 = vmatprep.subr.bf16.mxu1 %v677_v11  ;;  %v692_v26 = vld [vmem:[%s892_s1 + $0x30] sm:$0xff]   ;;  %v696_v30 = vld [vmem:[%s892_s1 + $0x38] sm:$0xff]   ;;  %v705_v38 = vld [vmem:[%s892_s1 + $0x100] sm:$0xff]   ;;  %455 = vmatprep.mubr.bf16.mxu1 %v704_v37 }
   0xb   :  { %594 = vmatpush3.bf16.msra.mxu0 %v676_v10  ;;  %v693_v27 = vld [vmem:[%s892_s1 + $0xf0] sm:$0xff]   ;;  %v697_v31 = vld [vmem:[%s892_s1 + $0xf8] sm:$0xff]   ;;  %v706_v39 = vld [vmem:[%s892_s1 + $0x108] sm:$0xff]  }
   0xc   :  { %595 = vmatprep.subr.bf16.mxu0 %v679_v13  ;;  %v694_v28 = vld [vmem:[%s892_s1 + $0xb0] sm:$0xff]   ;;  %v700_v33 = vld [vmem:[%s893_s0 + $0x4] ss:$20 sps:$4 sm:$0xff]   ;;  %v702_v36 = vld [vmem:[%s893_s0 + $0x8] ss:$20 sps:$4 sm:$0xff]  }
   0xd   :  { %616 = vmatpush3.bf16.msra.mxu1 %v678_v12  ;;  %v698_v32 = vld [vmem:[%s893_s0] ss:$20 sps:$4 sm:$0xff]   ;;  %v701_v35 = vld [vmem:[%s892_s1 + $0xb8] sm:$0xff]   ;;  %414 = vmatprep.mubr.bf16.mxu0 %v700_v33  ;;  %v105_v44 = vld [vmem:[%s894_s2 + $0x8] sm:$0xff] }
   0xe   :  { %617 = vmatprep.subr.bf16.mxu1 %v681_v15  ;;  %v707_v40 = vld [vmem:[%s892_s1 + $0x110] sm:$0xff]   ;;  %v104_v41 = vld [vmem:[%s894_s2] sm:$0xff]  ;;  %v708_v43 = vld [vmem:[%s892_s1 + $0x118] sm:$0xff]  }
   0xf   :  { %596 = vmatpush3.bf16.msra.mxu0 %v680_v14  ;;  %108 = vperm.xlu0 %665, %v104_v41   ;;  %v505_v42 = vld [vmem:[%s895_s3] sm:$0xff]  ;;  %v506_v45 = vld [vmem:[%s895_s3 + $0x8] sm:$0xff]  ;;  %v711_v48 = vld [vmem:[%s892_s1 + $0x130] sm:$0xff]  }
  0x10   :  { %597 = vmatprep.subr.bf16.mxu0 %v683_v17  ;;  %509 = vperm.xlu1 %666, %v505_v42   ;;  %v709_v46 = vld [vmem:[%s892_s1 + $0x120] sm:$0xff]   ;;  %v710_v47 = vld [vmem:[%s892_s1 + $0x128] sm:$0xff]   ;;  %v712_v49 = vld [vmem:[%s892_s1 + $0x138] sm:$0xff]  }
  0x11   :  { %618 = vmatpush3.bf16.msra.mxu1 %v682_v16  ;;  %v713_v50 = vld [vmem:[%s893_s0 + $0x10] ss:$20 sps:$4 sm:$0xff]  }
  0x12   :  { %619 = vmatprep.subr.bf16.mxu1 %v685_v19 }
  0x13   :  { %598 = vmatpush3.bf16.msra.mxu0 %v684_v18  ;;  %113 = vperm.xlu0 %665, %v105_v44  }
  0x14   :  { %599 = vmatprep.subr.bf16.mxu0 %v687_v21  ;;  %514 = vperm.xlu1 %666, %v506_v45  }
  0x15   :  { %620 = vmatpush3.bf16.msra.mxu1 %v686_v20 }
  0x16   :  { %621 = vmatprep.subr.bf16.mxu1 %v689_v23 }
  0x17   :  { %600 = vmatpush3.bf16.msra.mxu0 %v688_v22 }
  0x18   :  { %601 = vmatprep.subr.bf16.mxu0 %v691_v25 }
  0x19   :  { %622 = vmatpush3.bf16.msra.mxu1 %v690_v24 }
  0x1a   :  { %623 = vmatprep.subr.bf16.mxu1 %v693_v27 }
  0x1b   :  { %602 = vmatpush3.bf16.msra.mxu0 %v692_v26 }
  0x1c   :  { %603 = vmatprep.subr.bf16.mxu0 %v695_v29 }
  0x1d   :  { %624 = vmatpush3.bf16.msra.mxu1 %v694_v28 }
  0x1e   :  { %625 = vmatprep.subr.bf16.mxu1 %v697_v31 }
  0x1f   :  { %604 = vmatpush3.bf16.msra.mxu0 %v696_v30 }
  0x20   :  { %642 = vmatprep.subr.bf16.mxu0 %v715_v34 }
  0x21   :  { %626 = vmatpush3.bf16.msra.mxu1 %v701_v35 }
  0x22   :  { %415 = vmatmul.mubr.bf16.vlgmr.msra.gmra.mrb[0].mxu0 %v698_v32 }
  0x23   :  { %658 = vmatprep.mubr.msk.bf16.mxu0 %vm716_vm0, %v715_v34  ;;  %643 = vmatpush3.bf16.msra.mxu0 %v705_v38 }
  0x24   :  { %456 = vmatmul.mubr.bf16.vlgmr.msra.gmra.mrb[0].mxu1 %v702_v36  ;;  %644 = vmatprep.subr.bf16.mxu0 %v715_v34 }
  0x27   :  { %645 = vmatpush3.bf16.msra.mxu0 %v706_v39 }
  0x28   :  { %646 = vmatprep.subr.bf16.mxu0 %v715_v34 }
  0x2b   :  { %647 = vmatpush3.bf16.msra.mxu0 %v707_v40 }
  0x2c   :  { %648 = vmatprep.subr.bf16.mxu0 %v715_v34 }
  0x2f   :  { %649 = vmatpush3.bf16.msra.mxu0 %v708_v43 }
  0x30   :  { %650 = vmatprep.subr.bf16.mxu0 %v715_v34 }
  0x33   :  { %651 = vmatpush3.bf16.msra.mxu0 %v709_v46 }
  0x34   :  { %652 = vmatprep.subr.bf16.mxu0 %v715_v34 }
  0x37   :  { %653 = vmatpush3.bf16.msra.mxu0 %v710_v47 }
  0x38   :  { %654 = vmatprep.subr.bf16.mxu0 %v715_v34 }
  0x3b   :  { %655 = vmatpush3.bf16.msra.mxu0 %v711_v48 }
  0x3c   :  { %656 = vmatprep.subr.bf16.mxu0 %v715_v34 }
  0x3f   :  { %657 = vmatpush3.bf16.msra.mxu0 %v712_v49 }
  0x42   :  { %659 = vmatmul.mubr.bf16.vlgmr.msra.gmra.mrb[4].mxu0 %v713_v50 }
  0x8e   :  { %v109_v51 = vpop.permute.xlu0 %108 }
  0x8f   :  { %v510_v5 = vpop.permute.xlu1 %509 }
  0x92   :  { %v114_v56 = vpop.permute.xlu0 %113 }
  0x93   :  { %v515_v13 = vpop.permute.xlu1 %514 }
  0xf5   :  { %v605_v52 = vpop.f32.mrb[0].mxu0 }
  0xf6   :  { %v606_v53 = vpop.f32.mrb[1].mxu0 }
  0xf7   :  { %v607_v54 = vadd.f32 %v606_v53, %v605_v52  ;;  %v608_v55 = vpop.f32.mrb[2].mxu0  ;;  %v627_v57 = vpop.f32.mrb[0].mxu1 }
  0xf8   :  { %v609_v58 = vpop.f32.mrb[3].mxu0  ;;  %v628_v61 = vpop.f32.mrb[1].mxu1 }
  0xf9   :  { %v417_v59 = vadd.f32 %v607_v54, %v109_v51  ;;  %v610_v60 = vadd.f32 %v609_v58, %v608_v55  ;;  %v629_v62 = vadd.f32 %v628_v61, %v627_v57  ;;  %v630_v63 = vpop.f32.mrb[2].mxu1 }
  0xfa   :  { %v631_v1 = vpop.f32.mrb[3].mxu1 }
  0xfb   :  { %v420_v0 = vadd.f32 %v610_v60, %v114_v56  ;;  %v632_v2 = vadd.f32 %v631_v1, %v630_v63  ;;  %v458_v3 = vadd.f32 %v629_v62, %v417_v59 }
  0xfd   :  { %v461_v4 = vadd.f32 %v632_v2, %v420_v0 }
 0x115   :  { %v498_v6 = vpop.f32.mrb[4].mxu0 }
 0x116   :  { %v499_v7 = vadd.f32 %v498_v6, %v458_v3  ;;  %v660_v8 = vpop.f32.mrb[5].mxu0 }
 0x117   :  { %v501_v9 = vpop.f32.mrb[6].mxu0 }
 0x118   :  { %v517_v10 = vmul.f32 %v510_v5, %v499_v7  ;;  %v502_v11 = vadd.f32 %v501_v9, %v461_v4  ;;  %v661_v12 = vpop.f32.mrb[7].mxu0 }
 0x11a   :  { %v518_v14 = vmul.f32 %v515_v13, %v502_v11  ;;  %v519_v15 = vmax.f32 %v517_v10, 0.0 }
 0x11c   :  { %v520_v16 = vmax.f32 %v518_v14, 0.0 }
 0x11e   :  { %v587_v17 = vpack.c.bf16 %v520_v16, %v519_v15 }
 0x120   :  { %588 = vst [vmem:[%s896_s4] sm:$0xff] %v587_v17  }

// kernel: ewc_dqn_forward.7
= control target key start
LH: loop header
LB: loop body
LE: loop exit
PB: predicated region body
PF: predicated region fallthrough
CT: control target
= control target key end

     0   :  { %v1698_v3 = vmov 0   ;;  %s2184_s1 = inlined_call_operand.vmem [shape: bf16[128,1024], index: 1, kind: input, shape index: {}]   ;;  %s2185_s0 = inlined_call_operand.vmem [shape: bf16[16,128], index: 0, kind: input, shape index: {}]   ;;  %s2186_s4 = inlined_call_operand.vmem [shape: bf16[1024,128], index: 4, kind: input, shape index: {}]   ;;  %s2187_s2 = inlined_call_operand.vmem [shape: f32[1,1024], index: 2, kind: input, shape index: {}]   ;;  %s2188_s3 = inlined_call_operand.vmem [shape: f32[1,1024], index: 3, kind: input, shape index: {}]   ;;  %s2189_s5 = inlined_call_operand.vmem [shape: f32[1,128], index: 5, kind: input, shape index: {}]   ;;  %s2190_s6 = inlined_call_operand.vmem [shape: f32[1,128], index: 6, kind: input, shape index: {}]   ;;  %s2191_s7 = inlined_call_operand.vmem [shape: f32[16,128], index: 7, kind: output, shape index: {}]  }
   0x1   :  { %v29_v0 = vld [vmem:[%s2184_s1] sm:$0xff]  ;;  %v30_v2 = vld [vmem:[%s2184_s1 + $0x8] sm:$0xff]  ;;  %493 = vmatprep.mubr.bf16.mxu0 %v1698_v3  ;;  %536 = vmatprep.mubr.bf16.mxu1 %v1698_v3  ;;  %v31_v60 = vld [vmem:[%s2184_s1 + $0x10] sm:$0xff] }
   0x2   :  { %v33_v1 = vld [vmem:[%s2184_s1 + $0x20] sm:$0xff]  ;;  %v34_v5 = vld [vmem:[%s2184_s1 + $0x28] sm:$0xff]  ;;  %v35_v63 = vld [vmem:[%s2184_s1 + $0x30] sm:$0xff] }
   0x3   :  { %v1415_v4 = vcombine.high %v29_v0, %v33_v1  ;;  %v1414_v6 = vcombine.low %v29_v0, %v33_v1  ;;  %v37_v7 = vld [vmem:[%s2184_s1 + $0x40] sm:$0xff]  ;;  %v1417_v9 = vcombine.high %v30_v2, %v34_v5  ;;  %v1416_v10 = vcombine.low %v30_v2, %v34_v5  ;;  %v38_v12 = vld [vmem:[%s2184_s1 + $0x48] sm:$0xff]  ;;  %v32_v1 = vld [vmem:[%s2184_s1 + $0x18] sm:$0xff] }
   0x4   :  { %v41_v8 = vld [vmem:[%s2184_s1 + $0x60] sm:$0xff]  ;;  %v42_v13 = vld [vmem:[%s2184_s1 + $0x68] sm:$0xff]  ;;  %v36_v2 = vld [vmem:[%s2184_s1 + $0x38] sm:$0xff] }
   0x5   :  { %v1423_v11 = vcombine.high %v37_v7, %v41_v8  ;;  %v45_v14 = vld [vmem:[%s2184_s1 + $0x80] sm:$0xff]  ;;  %461 = vmatprep.subr.bf16.mxu0 %v1415_v4  ;;  %v1425_v15 = vcombine.high %v38_v12, %v42_v13  ;;  %v46_v17 = vld [vmem:[%s2184_s1 + $0x88] sm:$0xff]  ;;  %504 = vmatprep.subr.bf16.mxu1 %v1417_v9  ;;  %v1422_v19 = vcombine.low %v37_v7, %v41_v8  ;;  %v39_v5 = vld [vmem:[%s2184_s1 + $0x50] sm:$0xff] }
   0x6   :  { %v49_v16 = vld [vmem:[%s2184_s1 + $0xa0] sm:$0xff]  ;;  %v50_v18 = vld [vmem:[%s2184_s1 + $0xa8] sm:$0xff]  ;;  %462 = vmatpush1.bf16.msra.mxu0 %v1414_v6  ;;  %505 = vmatpush1.bf16.msra.mxu1 %v1416_v10  ;;  %v1424_v20 = vcombine.low %v38_v12, %v42_v13  ;;  %v1419_v8 = vcombine.high %v31_v60, %v35_v63  ;;  %v43_v9 = vld [vmem:[%s2184_s1 + $0x70] sm:$0xff]  ;;  %v1421_v10 = vcombine.high %v32_v1, %v36_v2 }
   0x7   :  { %463 = vmatprep.subr.bf16.mxu0 %v1423_v11  ;;  %v1431_v21 = vcombine.high %v45_v14, %v49_v16  ;;  %506 = vmatprep.subr.bf16.mxu1 %v1425_v15  ;;  %v1433_v22 = vcombine.high %v46_v17, %v50_v18  ;;  %v53_v23 = vld [vmem:[%s2184_s1 + $0xc0] sm:$0xff]  ;;  %v54_v25 = vld [vmem:[%s2184_s1 + $0xc8] sm:$0xff]  ;;  %v1430_v27 = vcombine.low %v45_v14, %v49_v16  ;;  %v40_v11 = vld [vmem:[%s2184_s1 + $0x58] sm:$0xff] }
   0x8   :  { %v57_v24 = vld [vmem:[%s2184_s1 + $0xe0] sm:$0xff]  ;;  %v58_v26 = vld [vmem:[%s2184_s1 + $0xe8] sm:$0xff]  ;;  %v1432_v28 = vcombine.low %v46_v17, %v50_v18  ;;  %v44_v12 = vld [vmem:[%s2184_s1 + $0x78] sm:$0xff]  ;;  %v1418_v13 = vcombine.low %v31_v60, %v35_v63  ;;  %v1420_v15 = vcombine.low %v32_v1, %v36_v2  ;;  %v1427_v16 = vcombine.high %v39_v5, %v43_v9 }
   0x9   :  { %v1439_v29 = vcombine.high %v53_v23, %v57_v24  ;;  %v1441_v30 = vcombine.high %v54_v25, %v58_v26  ;;  %v61_v31 = vld [vmem:[%s2184_s1 + $0x100] sm:$0xff]  ;;  %v62_v33 = vld [vmem:[%s2184_s1 + $0x108] sm:$0xff]  ;;  %v1438_v35 = vcombine.low %v53_v23, %v57_v24  ;;  %v1440_v36 = vcombine.low %v54_v25, %v58_v26  ;;  %v47_v14 = vld [vmem:[%s2184_s1 + $0x90] sm:$0xff] }
   0xa   :  { %464 = vmatpush1.bf16.msra.mxu0 %v1422_v19  ;;  %507 = vmatpush1.bf16.msra.mxu1 %v1424_v20  ;;  %v65_v32 = vld [vmem:[%s2184_s1 + $0x120] sm:$0xff]  ;;  %v66_v34 = vld [vmem:[%s2184_s1 + $0x128] sm:$0xff]  ;;  %v51_v17 = vld [vmem:[%s2184_s1 + $0xb0] sm:$0xff]  ;;  %v1429_v18 = vcombine.high %v40_v11, %v44_v12  ;;  %v1428_v23 = vcombine.low %v40_v11, %v44_v12 }
   0xb   :  { %465 = vmatprep.subr.bf16.mxu0 %v1431_v21  ;;  %508 = vmatprep.subr.bf16.mxu1 %v1433_v22  ;;  %v1447_v37 = vcombine.high %v61_v31, %v65_v32  ;;  %v1449_v38 = vcombine.high %v62_v33, %v66_v34  ;;  %v69_v39 = vld [vmem:[%s2184_s1 + $0x140] sm:$0xff]  ;;  %v70_v41 = vld [vmem:[%s2184_s1 + $0x148] sm:$0xff]  ;;  %v1446_v43 = vcombine.low %v61_v31, %v65_v32  ;;  %v48_v19 = vld [vmem:[%s2184_s1 + $0x98] sm:$0xff] }
   0xc   :  { %v73_v40 = vld [vmem:[%s2184_s1 + $0x160] sm:$0xff]  ;;  %v74_v42 = vld [vmem:[%s2184_s1 + $0x168] sm:$0xff]  ;;  %v1448_v44 = vcombine.low %v62_v33, %v66_v34  ;;  %v52_v20 = vld [vmem:[%s2184_s1 + $0xb8] sm:$0xff]  ;;  %v1426_v21 = vcombine.low %v39_v5, %v43_v9  ;;  %v1435_v24 = vcombine.high %v47_v14, %v51_v17 }
   0xd   :  { %v1455_v45 = vcombine.high %v69_v39, %v73_v40  ;;  %v1457_v46 = vcombine.high %v70_v41, %v74_v42  ;;  %v77_v47 = vld [vmem:[%s2184_s1 + $0x180] sm:$0xff]  ;;  %v78_v49 = vld [vmem:[%s2184_s1 + $0x188] sm:$0xff]  ;;  %v1454_v51 = vcombine.low %v69_v39, %v73_v40  ;;  %v1456_v52 = vcombine.low %v70_v41, %v74_v42  ;;  %v55_v22 = vld [vmem:[%s2184_s1 + $0xd0] sm:$0xff] }
   0xe   :  { %466 = vmatpush1.bf16.msra.mxu0 %v1430_v27  ;;  %509 = vmatpush1.bf16.msra.mxu1 %v1432_v28  ;;  %v81_v48 = vld [vmem:[%s2184_s1 + $0x1a0] sm:$0xff]  ;;  %v82_v50 = vld [vmem:[%s2184_s1 + $0x1a8] sm:$0xff]  ;;  %v59_v25 = vld [vmem:[%s2184_s1 + $0xf0] sm:$0xff]  ;;  %v1437_v26 = vcombine.high %v48_v19, %v52_v20  ;;  %v1436_v31 = vcombine.low %v48_v19, %v52_v20 }
   0xf   :  { %467 = vmatprep.subr.bf16.mxu0 %v1439_v29  ;;  %510 = vmatprep.subr.bf16.mxu1 %v1441_v30  ;;  %v1463_v53 = vcombine.high %v77_v47, %v81_v48  ;;  %v85_v54 = vld [vmem:[%s2184_s1 + $0x1c0] sm:$0xff]  ;;  %v1465_v56 = vcombine.high %v78_v49, %v82_v50  ;;  %v86_v57 = vld [vmem:[%s2184_s1 + $0x1c8] sm:$0xff]  ;;  %v1462_v59 = vcombine.low %v77_v47, %v81_v48  ;;  %v56_v27 = vld [vmem:[%s2184_s1 + $0xd8] sm:$0xff] }
  0x10   :  { %v89_v55 = vld [vmem:[%s2184_s1 + $0x1e0] sm:$0xff]  ;;  %v90_v58 = vld [vmem:[%s2184_s1 + $0x1e8] sm:$0xff]  ;;  %v1464_v61 = vcombine.low %v78_v49, %v82_v50  ;;  %v60_v28 = vld [vmem:[%s2184_s1 + $0xf8] sm:$0xff]  ;;  %v1434_v29 = vcombine.low %v47_v14, %v51_v17  ;;  %v1443_v32 = vcombine.high %v55_v22, %v59_v25 }
  0x11   :  { %v1471_v62 = vcombine.high %v85_v54, %v89_v55  ;;  %v1473_v0 = vcombine.high %v86_v57, %v90_v58  ;;  %v1470_v4 = vcombine.low %v85_v54, %v89_v55  ;;  %v1472_v6 = vcombine.low %v86_v57, %v90_v58  ;;  %v1855_v7 = vld [vmem:[%s2185_s0] sm:$0xff]   ;;  %v63_v30 = vld [vmem:[%s2184_s1 + $0x110] sm:$0xff]  ;;  %v72_v41 = vld [vmem:[%s2184_s1 + $0x158] sm:$0xff] }
  0x12   :  { %468 = vmatpush1.bf16.msra.mxu0 %v1438_v35  ;;  %511 = vmatpush1.bf16.msra.mxu1 %v1440_v36  ;;  %v67_v33 = vld [vmem:[%s2184_s1 + $0x130] sm:$0xff]  ;;  %v1445_v34 = vcombine.high %v56_v27, %v60_v28  ;;  %v68_v35 = vld [vmem:[%s2184_s1 + $0x138] sm:$0xff]  ;;  %v1442_v36 = vcombine.low %v55_v22, %v59_v25  ;;  %v1444_v39 = vcombine.low %v56_v27, %v60_v28  ;;  %v1635_v2 = vld [vmem:[%s2186_s4 + $0xc0] sm:$0xff]  }
  0x13   :  { %469 = vmatprep.subr.bf16.mxu0 %v1447_v37  ;;  %512 = vmatprep.subr.bf16.mxu1 %v1449_v38  ;;  %v71_v37 = vld [vmem:[%s2184_s1 + $0x150] sm:$0xff]  ;;  %v1451_v40 = vcombine.high %v63_v30, %v67_v33  ;;  %v76_v42 = vld [vmem:[%s2184_s1 + $0x178] sm:$0xff]  ;;  %v1636_v5 = vld [vmem:[%s2186_s4] sm:$0xff]  }
  0x14   :  { %v75_v38 = vld [vmem:[%s2184_s1 + $0x170] sm:$0xff]  ;;  %v80_v49 = vld [vmem:[%s2184_s1 + $0x198] sm:$0xff]  ;;  %v1460_v55 = vcombine.low %v72_v41, %v76_v42  ;;  %v1639_v9 = vld [vmem:[%s2186_s4 + $0xc8] sm:$0xff]  }
  0x15   :  { %v1459_v48 = vcombine.high %v71_v37, %v75_v38  ;;  %v84_v50 = vld [vmem:[%s2184_s1 + $0x1b8] sm:$0xff]  ;;  %v91_v54 = vld [vmem:[%s2184_s1 + $0x1f0] sm:$0xff]  ;;  %v1641_v11 = vld [vmem:[%s2186_s4 + $0x88] sm:$0xff]  }
  0x16   :  { %470 = vmatpush1.bf16.msra.mxu0 %v1446_v43  ;;  %513 = vmatpush1.bf16.msra.mxu1 %v1448_v44  ;;  %v1450_v44 = vcombine.low %v63_v30, %v67_v33  ;;  %v88_v57 = vld [vmem:[%s2184_s1 + $0x1d8] sm:$0xff]  ;;  %v1642_v12 = vld [vmem:[%s2186_s4 + $0x50] sm:$0xff]   ;;  %v1650_v19 = vld [vmem:[%s2186_s4 + $0x60] sm:$0xff]  }
  0x17   :  { %471 = vmatprep.subr.bf16.mxu0 %v1455_v45  ;;  %514 = vmatprep.subr.bf16.mxu1 %v1457_v46  ;;  %v79_v45 = vld [vmem:[%s2184_s1 + $0x190] sm:$0xff]  ;;  %v92_v58 = vld [vmem:[%s2184_s1 + $0x1f8] sm:$0xff]  ;;  %v1651_v20 = vld [vmem:[%s2186_s4 + $0xe0] sm:$0xff]  }
  0x18   :  { %v83_v46 = vld [vmem:[%s2184_s1 + $0x1b0] sm:$0xff]  ;;  %v1477_v63 = vcombine.high %v88_v57, %v92_v58  ;;  %v1648_v17 = vld [vmem:[%s2186_s4 + $0x18] sm:$0xff]   ;;  %v1653_v22 = vld [vmem:[%s2186_s4 + $0xa0] sm:$0xff]  }
  0x19   :  { %v1466_v60 = vcombine.low %v79_v45, %v83_v46  ;;  %v1644_v14 = vld [vmem:[%s2186_s4 + $0x10] sm:$0xff]   ;;  %v1656_v25 = vld [vmem:[%s2186_s4 + $0x28] sm:$0xff]   ;;  %v1664_v33 = vld [vmem:[%s2186_s4 + $0x38] sm:$0xff]  }
  0x1a   :  { %472 = vmatpush1.bf16.msra.mxu0 %v1454_v51  ;;  %515 = vmatpush1.bf16.msra.mxu1 %v1456_v52  ;;  %v1461_v51 = vcombine.high %v72_v41, %v76_v42  ;;  %v1458_v52 = vcombine.low %v71_v37, %v75_v38  ;;  %v1658_v27 = vld [vmem:[%s2186_s4 + $0x70] sm:$0xff]  }
  0x1b   :  { %473 = vmatprep.subr.bf16.mxu0 %v1463_v53  ;;  %516 = vmatprep.subr.bf16.mxu1 %v1465_v56  ;;  %v87_v53 = vld [vmem:[%s2184_s1 + $0x1d0] sm:$0xff]  ;;  %v1467_v56 = vcombine.high %v79_v45, %v83_v46 }
  0x1c   :  { %v1474_v1 = vcombine.low %v87_v53, %v91_v54  ;;  %v1659_v28 = vld [vmem:[%s2186_s4 + $0xf0] sm:$0xff]  }
  0x1d   :  { %v1661_v30 = vld [vmem:[%s2186_s4 + $0xb0] sm:$0xff]  }
  0x1e   :  { %474 = vmatpush1.bf16.msra.mxu0 %v1462_v59  ;;  %517 = vmatpush1.bf16.msra.mxu1 %v1464_v61  ;;  %v1469_v59 = vcombine.high %v80_v49, %v84_v50  ;;  %v1468_v61 = vcombine.low %v80_v49, %v84_v50 }
  0x1f   :  { %475 = vmatprep.subr.bf16.mxu0 %v1471_v62  ;;  %518 = vmatprep.subr.bf16.mxu1 %v1473_v0  ;;  %v1475_v62 = vcombine.high %v87_v53, %v91_v54  ;;  %v1634_v0 = vld [vmem:[%s2186_s4 + $0x40] sm:$0xff]  }
  0x22   :  { %476 = vmatpush1.bf16.msra.mxu0 %v1470_v4  ;;  %519 = vmatpush1.bf16.msra.mxu1 %v1472_v6  ;;  %v1476_v4 = vcombine.low %v88_v57, %v92_v58  ;;  %v1637_v6 = vld [vmem:[%s2186_s4 + $0x80] sm:$0xff]  }
  0x23   :  { %547 = vmatprep.subr.bf16.mxu0 %v1419_v8  ;;  %590 = vmatprep.subr.bf16.mxu1 %v1421_v10  ;;  %v1638_v8 = vld [vmem:[%s2186_s4 + $0x48] sm:$0xff]  }
  0x24   :  { %v1640_v10 = vld [vmem:[%s2186_s4 + $0x8] sm:$0xff]  }
  0x25   :  { %494 = vmatmul.mubr.bf16.vlgmr.msra.gmra.mrb[0].mxu0 %v1855_v7  ;;  %537 = vmatmul.mubr.bf16.vlgmr.msra.gmra.mrb[0].mxu1 %v1855_v7 }
  0x26   :  { %548 = vmatpush1.bf16.msra.mxu0 %v1418_v13  ;;  %591 = vmatpush1.bf16.msra.mxu1 %v1420_v15  ;;  %v1643_v13 = vld [vmem:[%s2186_s4 + $0xd0] sm:$0xff]  }
  0x27   :  { %549 = vmatprep.subr.bf16.mxu0 %v1427_v16  ;;  %592 = vmatprep.subr.bf16.mxu1 %v1429_v18  ;;  %v1645_v15 = vld [vmem:[%s2186_s4 + $0x90] sm:$0xff]   ;;  %v1647_v16 = vld [vmem:[%s2186_s4 + $0xd8] sm:$0xff]  }
  0x28   :  { %579 = vmatprep.mubr.bf16.mxu0 %v1698_v3  ;;  %622 = vmatprep.mubr.bf16.mxu1 %v1698_v3  ;;  %v64_v3 = vld [vmem:[%s2184_s1 + $0x118] sm:$0xff] }
  0x29   :  { %v1453_v43 = vcombine.high %v64_v3, %v68_v35  ;;  %v1452_v47 = vcombine.low %v64_v3, %v68_v35  ;;  %v1649_v18 = vld [vmem:[%s2186_s4 + $0x98] sm:$0xff]   ;;  %v1666_v3 = vld [vmem:[%s2186_s4 + $0x140] sm:$0xff]  }
  0x2a   :  { %550 = vmatpush1.bf16.msra.mxu0 %v1426_v21  ;;  %593 = vmatpush1.bf16.msra.mxu1 %v1428_v23  ;;  %v1652_v21 = vld [vmem:[%s2186_s4 + $0x20] sm:$0xff]   ;;  %v1654_v23 = vld [vmem:[%s2186_s4 + $0x68] sm:$0xff]  }
  0x2b   :  { %551 = vmatprep.subr.bf16.mxu0 %v1435_v24  ;;  %594 = vmatprep.subr.bf16.mxu1 %v1437_v26  ;;  %v1655_v24 = vld [vmem:[%s2186_s4 + $0xe8] sm:$0xff]   ;;  %v1667_v35 = vld [vmem:[%s2186_s4 + $0x1c0] sm:$0xff]  }
  0x2c   :  { %v1657_v26 = vld [vmem:[%s2186_s4 + $0xa8] sm:$0xff]  }
  0x2e   :  { %552 = vmatpush1.bf16.msra.mxu0 %v1434_v29  ;;  %595 = vmatpush1.bf16.msra.mxu1 %v1436_v31  ;;  %v1660_v29 = vld [vmem:[%s2186_s4 + $0x30] sm:$0xff]   ;;  %v1662_v31 = vld [vmem:[%s2186_s4 + $0x78] sm:$0xff]  }
  0x2f   :  { %553 = vmatprep.subr.bf16.mxu0 %v1443_v32  ;;  %596 = vmatprep.subr.bf16.mxu1 %v1445_v34  ;;  %v1663_v32 = vld [vmem:[%s2186_s4 + $0xf8] sm:$0xff]  }
  0x30   :  { %v1665_v34 = vld [vmem:[%s2186_s4 + $0xb8] sm:$0xff]  }
  0x32   :  { %554 = vmatpush1.bf16.msra.mxu0 %v1442_v36  ;;  %597 = vmatpush1.bf16.msra.mxu1 %v1444_v39  ;;  %v95_v36 = vlaneseq  ;;  %v2052_v39 = vld [vmem:[%s2187_s2] sm:$0xff] }
  0x33   :  { %555 = vmatprep.subr.bf16.mxu0 %v1451_v40  ;;  %598 = vmatprep.subr.bf16.mxu1 %v1453_v43  ;;  %v2060_v43 = vld [vmem:[%s2188_s3] sm:$0xff] }
  0x34   :  { %v2046_v37 = vshrl.u32 %v95_v36, 7  ;;  %v1680_v36 = vld [vmem:[%s2186_s4 + $0x118] sm:$0xff]  }
  0x36   :  { %556 = vmatpush1.bf16.msra.mxu0 %v1450_v44  ;;  %599 = vmatpush1.bf16.msra.mxu1 %v1452_v47  ;;  %v97_v38 = vsub.s32 0, %v2046_v37  ;;  %v105_v40 = vsub.s32 2, %v2046_v37  ;;  %v101_v41 = vsub.s32 1, %v2046_v37  ;;  %v109_v42 = vsub.s32 3, %v2046_v37 }
  0x37   :  { %557 = vmatprep.subr.bf16.mxu0 %v1459_v48  ;;  %600 = vmatprep.subr.bf16.mxu1 %v1461_v51 }
  0x38   :  { %v98_v44 = vrot.slane %v2052_v39, %v97_v38  ;;  %v106_v45 = vrot.slane %v2052_v39, %v105_v40  ;;  %v102_v46 = vrot.slane %v2052_v39, %v101_v41  ;;  %v638_v47 = vrot.slane %v2060_v43, %v97_v38  ;;  %v1681_v38 = vld [vmem:[%s2186_s4 + $0x198] sm:$0xff]  }
  0x39   :  { %v110_v48 = vrot.slane %v2052_v39, %v109_v42  ;;  %v646_v50 = vrot.slane %v2060_v43, %v105_v40  ;;  %v642_v51 = vrot.slane %v2060_v43, %v101_v41  ;;  %v1682_v40 = vld [vmem:[%s2186_s4 + $0x160] sm:$0xff]  }
  0x3a   :  { %558 = vmatpush1.bf16.msra.mxu0 %v1458_v52  ;;  %601 = vmatpush1.bf16.msra.mxu1 %v1460_v55  ;;  %v650_v55 = vrot.slane %v2060_v43, %v109_v42  ;;  %v1683_v41 = vld [vmem:[%s2186_s4 + $0x1e0] sm:$0xff]   ;;  %v113_v42 = vsub.s32 4, %v2046_v37 }
  0x3b   :  { %559 = vmatprep.subr.bf16.mxu0 %v1467_v56  ;;  %602 = vmatprep.subr.bf16.mxu1 %v1469_v59 }
  0x3e   :  { %560 = vmatpush1.bf16.msra.mxu0 %v1466_v60  ;;  %603 = vmatpush1.bf16.msra.mxu1 %v1468_v61 }
  0x3f   :  { %561 = vmatprep.subr.bf16.mxu0 %v1475_v62  ;;  %604 = vmatprep.subr.bf16.mxu1 %v1477_v63 }
  0x42   :  { %562 = vmatpush1.bf16.msra.mxu0 %v1474_v1  ;;  %605 = vmatpush1.bf16.msra.mxu1 %v1476_v4 }
  0x43   :  { %1544 = vmatprep.subr.bf16.mxu0 %v1634_v0  ;;  %1566 = vmatprep.subr.bf16.mxu1 %v1635_v2 }
  0x45   :  { %580 = vmatmul.mubr.bf16.vlgmr.msra.gmra.mrb[4].mxu0 %v1855_v7  ;;  %623 = vmatmul.mubr.bf16.vlgmr.msra.gmra.mrb[4].mxu1 %v1855_v7  ;;  %v1646_v7 = vld [vmem:[%s2186_s4 + $0x58] sm:$0xff]  }
  0x46   :  { %1545 = vmatpush3.bf16.msra.mxu0 %v1636_v5  ;;  %1567 = vmatpush3.bf16.msra.mxu1 %v1637_v6 }
  0x47   :  { %1546 = vmatprep.subr.bf16.mxu0 %v1638_v8  ;;  %1568 = vmatprep.subr.bf16.mxu1 %v1639_v9 }
  0x4a   :  { %1547 = vmatpush3.bf16.msra.mxu0 %v1640_v10  ;;  %1569 = vmatpush3.bf16.msra.mxu1 %v1641_v11 }
  0x4b   :  { %1548 = vmatprep.subr.bf16.mxu0 %v1642_v12  ;;  %1570 = vmatprep.subr.bf16.mxu1 %v1643_v13 }
  0x4e   :  { %1549 = vmatpush3.bf16.msra.mxu0 %v1644_v14  ;;  %1571 = vmatpush3.bf16.msra.mxu1 %v1645_v15 }
  0x4f   :  { %1550 = vmatprep.subr.bf16.mxu0 %v1646_v7  ;;  %1572 = vmatprep.subr.bf16.mxu1 %v1647_v16 }
  0x52   :  { %1551 = vmatpush3.bf16.msra.mxu0 %v1648_v17  ;;  %1573 = vmatpush3.bf16.msra.mxu1 %v1649_v18 }
  0x53   :  { %1552 = vmatprep.subr.bf16.mxu0 %v1650_v19  ;;  %1574 = vmatprep.subr.bf16.mxu1 %v1651_v20 }
  0x56   :  { %1553 = vmatpush3.bf16.msra.mxu0 %v1652_v21  ;;  %1575 = vmatpush3.bf16.msra.mxu1 %v1653_v22 }
  0x57   :  { %1554 = vmatprep.subr.bf16.mxu0 %v1654_v23  ;;  %1576 = vmatprep.subr.bf16.mxu1 %v1655_v24  ;;  %v1668_v24 = vld [vmem:[%s2186_s4 + $0x100] sm:$0xff]  }
  0x5a   :  { %1555 = vmatpush3.bf16.msra.mxu0 %v1656_v25  ;;  %1577 = vmatpush3.bf16.msra.mxu1 %v1657_v26  ;;  %v1669_v26 = vld [vmem:[%s2186_s4 + $0x180] sm:$0xff]  }
  0x5b   :  { %1556 = vmatprep.subr.bf16.mxu0 %v1658_v27  ;;  %1578 = vmatprep.subr.bf16.mxu1 %v1659_v28  ;;  %v1670_v27 = vld [vmem:[%s2186_s4 + $0x148] sm:$0xff]  }
  0x5c   :  { %v1671_v28 = vld [vmem:[%s2186_s4 + $0x1c8] sm:$0xff]  }
  0x5e   :  { %1557 = vmatpush3.bf16.msra.mxu0 %v1660_v29  ;;  %1579 = vmatpush3.bf16.msra.mxu1 %v1661_v30  ;;  %v1672_v29 = vld [vmem:[%s2186_s4 + $0x108] sm:$0xff]  }
  0x5f   :  { %1558 = vmatprep.subr.bf16.mxu0 %v1662_v31  ;;  %1580 = vmatprep.subr.bf16.mxu1 %v1663_v32  ;;  %v1673_v30 = vld [vmem:[%s2186_s4 + $0x188] sm:$0xff]   ;;  %v1674_v31 = vld [vmem:[%s2186_s4 + $0x150] sm:$0xff]  }
  0x60   :  { %v1675_v32 = vld [vmem:[%s2186_s4 + $0x1d0] sm:$0xff]  }
  0x62   :  { %1559 = vmatpush3.bf16.msra.mxu0 %v1664_v33  ;;  %1581 = vmatpush3.bf16.msra.mxu1 %v1665_v34  ;;  %v1676_v33 = vld [vmem:[%s2186_s4 + $0x110] sm:$0xff]  }
  0x63   :  { %1588 = vmatprep.subr.bf16.mxu0 %v1666_v3  ;;  %1610 = vmatprep.subr.bf16.mxu1 %v1667_v35  ;;  %v1677_v34 = vld [vmem:[%s2186_s4 + $0x190] sm:$0xff]   ;;  %v1678_v3 = vld [vmem:[%s2186_s4 + $0x158] sm:$0xff]  }
  0x64   :  { %v1679_v35 = vld [vmem:[%s2186_s4 + $0x1d8] sm:$0xff]  }
  0xf8   :  { %v495_v49 = vpop.f32.mrb[0].mxu0  ;;  %v538_v53 = vpop.f32.mrb[0].mxu1 }
  0xf9   :  { %v496_v52 = vadd.f32 %v495_v49, %v98_v44  ;;  %v497_v54 = vpop.f32.mrb[1].mxu0  ;;  %v539_v56 = vadd.f32 %v538_v53, %v106_v45  ;;  %v540_v58 = vpop.f32.mrb[1].mxu1  ;;  %v1686_v49 = vld [vmem:[%s2186_s4 + $0x168] sm:$0xff]  }
  0xfa   :  { %v498_v57 = vadd.f32 %v497_v54, %v102_v46  ;;  %v499_v59 = vpop.f32.mrb[2].mxu0  ;;  %v541_v61 = vadd.f32 %v540_v58, %v110_v48  ;;  %v542_v63 = vpop.f32.mrb[2].mxu1  ;;  %v654_v54 = vrot.slane %v2060_v43, %v113_v42 }
  0xfb   :  { %v675_v60 = vmul.f32 %v638_v47, %v496_v52  ;;  %v500_v62 = vadd.f32 %v499_v59, %v98_v44  ;;  %v501_v0 = vpop.f32.mrb[3].mxu0  ;;  %v677_v1 = vmul.f32 %v646_v50, %v539_v56  ;;  %v543_v4 = vadd.f32 %v542_v63, %v106_v45  ;;  %v544_v6 = vpop.f32.mrb[3].mxu1  ;;  %v1684_v44 = vld [vmem:[%s2186_s4 + $0x120] sm:$0xff]   ;;  %v1689_v56 = vld [vmem:[%s2186_s4 + $0x1a8] sm:$0xff]  }
  0xfc   :  { %v676_v2 = vmul.f32 %v642_v51, %v498_v57  ;;  %v502_v5 = vadd.f32 %v501_v0, %v102_v46  ;;  %v678_v9 = vmul.f32 %v650_v55, %v541_v61  ;;  %v545_v11 = vadd.f32 %v544_v6, %v110_v48  ;;  %v1690_v57 = vld [vmem:[%s2186_s4 + $0x170] sm:$0xff]  }
  0xfd   :  { %v691_v8 = vmax.f32 %v675_v60, 0.0  ;;  %v683_v10 = vmul.f32 %v638_v47, %v500_v62  ;;  %v693_v12 = vmax.f32 %v677_v1, 0.0  ;;  %v685_v13 = vmul.f32 %v646_v50, %v543_v4  ;;  %v1685_v47 = vld [vmem:[%s2186_s4 + $0x1a0] sm:$0xff]   ;;  %v1687_v50 = vld [vmem:[%s2186_s4 + $0x1e8] sm:$0xff]   ;;  %v1691_v61 = vld [vmem:[%s2186_s4 + $0x1f0] sm:$0xff]  }
  0xfe   :  { %v684_v14 = vmul.f32 %v642_v51, %v502_v5  ;;  %v694_v15 = vmax.f32 %v678_v9, 0.0  ;;  %v686_v16 = vmul.f32 %v650_v55, %v545_v11  ;;  %v692_v17 = vmax.f32 %v676_v2, 0.0  ;;  %v1692_v6 = vld [vmem:[%s2186_s4 + $0x130] sm:$0xff]  }
  0xff   :  { %v699_v7 = vmax.f32 %v683_v10, 0.0  ;;  %v701_v18 = vmax.f32 %v685_v13, 0.0  ;;  %v121_v45 = vsub.s32 6, %v2046_v37  ;;  %v117_v46 = vsub.s32 5, %v2046_v37  ;;  %v1694_v13 = vld [vmem:[%s2186_s4 + $0x178] sm:$0xff]  }
 0x100   :  { %v700_v19 = vmax.f32 %v684_v14, 0.0  ;;  %v702_v21 = vmax.f32 %v686_v16, 0.0  ;;  %v125_v48 = vsub.s32 7, %v2046_v37  ;;  %v114_v51 = vrot.slane %v2052_v39, %v113_v42  ;;  %v1688_v37 = vld [vmem:[%s2186_s4 + $0x128] sm:$0xff]   ;;  %v1478_v42 = vld [vmem:[%s2189_s5] ss:$0 sm:$0xff] }
 0x101   :  { %v707_v20 = vpack.c.bf16 %v699_v7, %v691_v8  ;;  %v709_v22 = vpack.c.bf16 %v701_v18, %v693_v12  ;;  %v122_v52 = vrot.slane %v2052_v39, %v121_v45  ;;  %v118_v53 = vrot.slane %v2052_v39, %v117_v46  ;;  %v1695_v18 = vld [vmem:[%s2186_s4 + $0x1f8] sm:$0xff]  }
 0x102   :  { %v708_v23 = vpack.c.bf16 %v700_v19, %v692_v17  ;;  %v710_v25 = vpack.c.bf16 %v702_v21, %v694_v15  ;;  %v126_v55 = vrot.slane %v2052_v39, %v125_v48  ;;  %v662_v59 = vrot.slane %v2060_v43, %v121_v45 }
 0x103   :  { %v658_v60 = vrot.slane %v2060_v43, %v117_v46  ;;  %v666_v0 = vrot.slane %v2060_v43, %v125_v48  ;;  %v1693_v43 = vld [vmem:[%s2186_s4 + $0x1b0] sm:$0xff]  }
 0x104   :  { %1266 = vmatprep.mubr.bf16.mxu0 %v708_v23  ;;  %1307 = vmatprep.mubr.bf16.mxu1 %v710_v25  ;;  %v1696_v25 = vld [vmem:[%s2186_s4 + $0x138] sm:$0xff]  }
 0x105   :  { %1267 = vmatmul.mubr.bf16.vlgmr.msra.gmra.mrb[8].mxu0 %v707_v20  ;;  %1308 = vmatmul.mubr.bf16.vlgmr.msra.gmra.mrb[8].mxu1 %v709_v22 }
 0x106   :  { %1589 = vmatpush3.bf16.msra.mxu0 %v1668_v24  ;;  %1611 = vmatpush3.bf16.msra.mxu1 %v1669_v26 }
 0x107   :  { %1590 = vmatprep.subr.bf16.mxu0 %v1670_v27  ;;  %1612 = vmatprep.subr.bf16.mxu1 %v1671_v28 }
 0x10a   :  { %1591 = vmatpush3.bf16.msra.mxu0 %v1672_v29  ;;  %1613 = vmatpush3.bf16.msra.mxu1 %v1673_v30  ;;  %v1697_v30 = vld [vmem:[%s2186_s4 + $0x1b8] sm:$0xff]  }
 0x10b   :  { %1592 = vmatprep.subr.bf16.mxu0 %v1674_v31  ;;  %1614 = vmatprep.subr.bf16.mxu1 %v1675_v32 }
 0x10e   :  { %1593 = vmatpush3.bf16.msra.mxu0 %v1676_v33  ;;  %1615 = vmatpush3.bf16.msra.mxu1 %v1677_v34 }
 0x10f   :  { %1594 = vmatprep.subr.bf16.mxu0 %v1678_v3  ;;  %1616 = vmatprep.subr.bf16.mxu1 %v1679_v35 }
 0x112   :  { %1595 = vmatpush3.bf16.msra.mxu0 %v1680_v36  ;;  %1617 = vmatpush3.bf16.msra.mxu1 %v1681_v38 }
 0x113   :  { %1596 = vmatprep.subr.bf16.mxu0 %v1682_v40  ;;  %1618 = vmatprep.subr.bf16.mxu1 %v1683_v41 }
 0x116   :  { %1597 = vmatpush3.bf16.msra.mxu0 %v1684_v44  ;;  %1619 = vmatpush3.bf16.msra.mxu1 %v1685_v47 }
 0x117   :  { %1598 = vmatprep.subr.bf16.mxu0 %v1686_v49  ;;  %1620 = vmatprep.subr.bf16.mxu1 %v1687_v50 }
 0x118   :  { %v581_v58 = vpop.f32.mrb[4].mxu0  ;;  %v624_v62 = vpop.f32.mrb[4].mxu1 }
 0x119   :  { %v582_v39 = vadd.f32 %v581_v58, %v114_v51  ;;  %v583_v63 = vpop.f32.mrb[5].mxu0  ;;  %v625_v1 = vadd.f32 %v624_v62, %v122_v52  ;;  %v626_v4 = vpop.f32.mrb[5].mxu1 }
 0x11a   :  { %v584_v2 = vadd.f32 %v583_v63, %v118_v53  ;;  %v585_v5 = vpop.f32.mrb[6].mxu0  ;;  %1599 = vmatpush3.bf16.msra.mxu0 %v1688_v37  ;;  %v627_v9 = vadd.f32 %v626_v4, %v126_v55  ;;  %v628_v11 = vpop.f32.mrb[6].mxu1  ;;  %1621 = vmatpush3.bf16.msra.mxu1 %v1689_v56 }
 0x11b   :  { %v679_v8 = vmul.f32 %v654_v54, %v582_v39  ;;  %v586_v10 = vadd.f32 %v585_v5, %v114_v51  ;;  %v587_v12 = vpop.f32.mrb[7].mxu0  ;;  %1600 = vmatprep.subr.bf16.mxu0 %v1690_v57  ;;  %v681_v14 = vmul.f32 %v662_v59, %v625_v1  ;;  %v629_v7 = vadd.f32 %v628_v11, %v122_v52  ;;  %v630_v17 = vpop.f32.mrb[7].mxu1  ;;  %v1543_v5 = vld [vmem:[%s2190_s6] ss:$0 sm:$0xff] }
 0x11c   :  { %v680_v15 = vmul.f32 %v658_v60, %v584_v2  ;;  %v588_v16 = vadd.f32 %v587_v12, %v118_v53  ;;  %1622 = vmatprep.subr.bf16.mxu1 %v1691_v61  ;;  %v682_v19 = vmul.f32 %v666_v0, %v627_v9  ;;  %v631_v21 = vadd.f32 %v630_v17, %v126_v55 }
 0x11d   :  { %v687_v20 = vmul.f32 %v654_v54, %v586_v10  ;;  %v697_v22 = vmax.f32 %v681_v14, 0.0  ;;  %v689_v23 = vmul.f32 %v662_v59, %v629_v7  ;;  %v695_v26 = vmax.f32 %v679_v8, 0.0 }
 0x11e   :  { %v688_v24 = vmul.f32 %v658_v60, %v588_v16  ;;  %1601 = vmatpush3.bf16.msra.mxu0 %v1692_v6  ;;  %v698_v27 = vmax.f32 %v682_v19, 0.0  ;;  %v690_v29 = vmul.f32 %v666_v0, %v631_v21  ;;  %1623 = vmatpush3.bf16.msra.mxu1 %v1693_v43  ;;  %v696_v31 = vmax.f32 %v680_v15, 0.0 }
 0x11f   :  { %v703_v28 = vmax.f32 %v687_v20, 0.0  ;;  %1602 = vmatprep.subr.bf16.mxu0 %v1694_v13  ;;  %v705_v32 = vmax.f32 %v689_v23, 0.0  ;;  %1624 = vmatprep.subr.bf16.mxu1 %v1695_v18 }
 0x120   :  { %v704_v33 = vmax.f32 %v688_v24, 0.0  ;;  %v706_v3 = vmax.f32 %v690_v29, 0.0 }
 0x121   :  { %v711_v34 = vpack.c.bf16 %v703_v28, %v695_v26  ;;  %v713_v35 = vpack.c.bf16 %v705_v32, %v697_v22 }
 0x122   :  { %1603 = vmatpush3.bf16.msra.mxu0 %v1696_v25  ;;  %v712_v36 = vpack.c.bf16 %v704_v33, %v696_v31  ;;  %1625 = vmatpush3.bf16.msra.mxu1 %v1697_v30  ;;  %v714_v38 = vpack.c.bf16 %v706_v3, %v698_v27 }
 0x124   :  { %1348 = vmatprep.mubr.bf16.mxu0 %v712_v36  ;;  %1389 = vmatprep.mubr.bf16.mxu1 %v714_v38 }
 0x125   :  { %1349 = vmatmul.mubr.bf16.vlgmr.msra.gmra.mrb[12].mxu0 %v711_v34  ;;  %1390 = vmatmul.mubr.bf16.vlgmr.msra.gmra.mrb[12].mxu1 %v713_v35 }
 0x1d8   :  { %v1560_v40 = vpop.f32.mrb[8].mxu0  ;;  %v1582_v41 = vpop.f32.mrb[8].mxu1 }
 0x1d9   :  { %v1561_v44 = vpop.f32.mrb[9].mxu0  ;;  %v1583_v46 = vpop.f32.mrb[9].mxu1 }
 0x1da   :  { %v1562_v45 = vadd.f32 %v1561_v44, %v1560_v40  ;;  %v1563_v47 = vpop.f32.mrb[10].mxu0  ;;  %v1584_v48 = vadd.f32 %v1583_v46, %v1582_v41  ;;  %v1585_v49 = vpop.f32.mrb[10].mxu1 }
 0x1db   :  { %v1564_v50 = vpop.f32.mrb[11].mxu0  ;;  %v1586_v53 = vpop.f32.mrb[11].mxu1 }
 0x1dc   :  { %v1269_v51 = vadd.f32 %v1562_v45, %v1478_v42  ;;  %v1565_v52 = vadd.f32 %v1564_v50, %v1563_v47  ;;  %v1587_v37 = vadd.f32 %v1586_v53, %v1585_v49 }
 0x1de   :  { %v1310_v54 = vadd.f32 %v1584_v48, %v1269_v51  ;;  %v1272_v55 = vadd.f32 %v1565_v52, %v1478_v42 }
 0x1e0   :  { %v1313_v56 = vadd.f32 %v1587_v37, %v1272_v55 }
 0x1f8   :  { %v1604_v57 = vpop.f32.mrb[12].mxu0  ;;  %v1626_v58 = vpop.f32.mrb[12].mxu1 }
 0x1f9   :  { %v1605_v59 = vpop.f32.mrb[13].mxu0  ;;  %v1627_v61 = vpop.f32.mrb[13].mxu1 }
 0x1fa   :  { %v1606_v60 = vadd.f32 %v1605_v59, %v1604_v57  ;;  %v1607_v39 = vpop.f32.mrb[14].mxu0  ;;  %v1628_v62 = vadd.f32 %v1627_v61, %v1626_v58  ;;  %v1629_v63 = vpop.f32.mrb[14].mxu1 }
 0x1fb   :  { %v1608_v0 = vpop.f32.mrb[15].mxu0  ;;  %v1630_v4 = vpop.f32.mrb[15].mxu1 }
 0x1fc   :  { %v1351_v1 = vadd.f32 %v1606_v60, %v1310_v54  ;;  %v1609_v2 = vadd.f32 %v1608_v0, %v1607_v39  ;;  %v1631_v6 = vadd.f32 %v1630_v4, %v1629_v63 }
 0x1fe   :  { %v1392_v8 = vadd.f32 %v1628_v62, %v1351_v1  ;;  %v1354_v9 = vadd.f32 %v1609_v2, %v1313_v56 }
 0x200   :  { %v1405_v10 = vmul.f32 %v1543_v5, %v1392_v8  ;;  %v1395_v11 = vadd.f32 %v1631_v6, %v1354_v9 }
 0x202   :  { %1407 = vst [vmem:[%s2191_s7] sm:$0xff] %v1405_v10  ;;  %v1406_v12 = vmul.f32 %v1543_v5, %v1395_v11 }
 0x204   :  { %1408 = vst [vmem:[%s2191_s7 + $0x8] sm:$0xff] %v1406_v12 }

</bundles_post_ra>
